<compile_context>
chip_gen: v5e
topology: v5e:2x2
jax: 0.10.0
libtpu: 0.0.40
codegen_flags: <defaults>
</compile_context>

<pallas_src>
import math

import jax
import jax.numpy as jnp
from jax.experimental import pallas as pl
from jax.experimental.pallas import tpu as pltpu


# ----------------------------------------------------------------------------
# Fused kernel: projection + mogrifier LSTM + TextCNN head, single invocation.
# ----------------------------------------------------------------------------
def make_mlog_kernel(filter_sizes, filter_num):
    filter_sizes = tuple(filter_sizes)

    def kernel(x_ref, w_in_ref, b_in_ref, q_ref, wr_ref, whh_ref, bg_ref,
               wall_ref, bconv_ref, linw_ref, linb_ref, out_ref, hs_sc):
        B, S, D_in = x_ref.shape
        H = whh_ref.shape[0]
        F = filter_num

        # ---- input projection, hoisted out of the recurrence (one matmul) ----
        x_flat = x_ref[...].reshape(B * S, D_in)
        xp = jnp.tanh(
            jnp.dot(x_flat, w_in_ref[...], preferred_element_type=jnp.float32)
            + b_in_ref[...])
        xp = xp.reshape(B, S, -1)                     # (B, S, D2), stays in vregs

        q = q_ref[...]                                # (H, D2)
        wr = wr_ref[...]                              # (D2, H + 4H)  = [R | Wih]
        whh = whh_ref[...]                            # (H, 4H)
        bg = bg_ref[...]                              # (1, 4H)       = bih + bhh

        ht = jnp.zeros((B, H), jnp.float32)
        ct = jnp.zeros((B, H), jnp.float32)

        # ---- mogrifier-LSTM recurrence: short static unroll, state in vregs ----
        for t in range(S):
            xt = xp[:, t, :]                          # static slice, (B, D2)
            # mogrify (mog_iterations = 2): i=1 odd -> update x, i=2 even -> h
            xt = 2.0 * jax.nn.sigmoid(
                jnp.dot(ht, q, preferred_element_type=jnp.float32)) * xt
            # fused [R | Wih] matmul (shared LHS xt)
            z = jnp.dot(xt, wr, preferred_element_type=jnp.float32)  # (B, 5H)
            ht = 2.0 * jax.nn.sigmoid(z[:, :H]) * ht
            gates = (z[:, H:]
                     + jnp.dot(ht, whh, preferred_element_type=jnp.float32)
                     + bg)                            # (B, 4H)
            it = jax.nn.sigmoid(gates[:, 0 * H:1 * H])
            ft = jax.nn.sigmoid(gates[:, 1 * H:2 * H])
            gt = jnp.tanh(gates[:, 2 * H:3 * H])
            ot = jax.nn.sigmoid(gates[:, 3 * H:4 * H])
            ct = ft * ct + it * gt
            ht = ot * jnp.tanh(ct)
            hs_sc[t] = ht                             # hidden_seq stays in VMEM

        # ---- TextCNN head: all conv taps as ONE matmul ----
        hs = hs_sc[...]                               # (S, B, H)
        proj = jnp.dot(hs.reshape(S * B, H), wall_ref[...],
                       preferred_element_type=jnp.float32)
        TF = wall_ref.shape[1]
        proj = proj.reshape(S, B, TF)

        linw = linw_ref[...]                          # (len(fs)*F, 2)
        bconv = bconv_ref[...]                        # (1, len(fs)*F)
        out = jnp.zeros((B, out_ref.shape[1]), jnp.float32)
        col = 0
        for g, fsz in enumerate(filter_sizes):
            P = S - fsz + 1
            acc = proj[0:P, :, col:col + F]           # (P, B, F)
            for k in range(1, fsz):                   # shifted adds (VPU only)
                acc = acc + proj[k:k + P, :, col + k * F: col + (k + 1) * F]
            col += fsz * F
            acc = jnp.maximum(
                acc + bconv[:, g * F:(g + 1) * F].reshape(1, 1, F), 0.0)  # ReLU
            pooled = jnp.max(acc, axis=0)             # max_pool2d -> (B, F)
            # final linear as sum of per-group partial matmuls (no concat)
            out = out + jnp.dot(pooled, linw[g * F:(g + 1) * F, :],
                                preferred_element_type=jnp.float32)

        # dropout(p=0.5) is identity at inference time
        out_ref[...] = out + linb_ref[...]

    return kernel


def mlog_forward(x, fp):
    """x: (batch, seq, input_sz) -> (batch, 2). Single fused pallas_call."""
    B, S, _ = x.shape
    H = fp["Whh"].shape[0]
    kernel = make_mlog_kernel(fp["filter_sizes"], fp["filter_num"])
    return pl.pallas_call(
        kernel,
        out_shape=jax.ShapeDtypeStruct((B, 2), jnp.float32),
        scratch_shapes=[pltpu.VMEM((S, B, H), jnp.float32)],  # hidden_seq
    )(x, fp["W_in"], fp["b_in"], fp["Q"], fp["WR"], fp["Whh"], fp["b_gates"],
      fp["W_all"], fp["b_conv"], fp["lin_w"], fp["lin_b"])


# ----------------------------------------------------------------------------
# Parameter init (Xavier-uniform for >=2D, zeros for biases) mirroring
# MLog.init_weights, plus one-time weight fusion for the kernel.
# ----------------------------------------------------------------------------
def xavier(key, shape, fan_in, fan_out):
    bound = math.sqrt(6.0 / (fan_in + fan_out))
    return jax.random.uniform(key, shape, jnp.float32, -bound, bound)


def init_params(key, input_sz, in_size2, hidden_sz, filter_num, filter_sizes):
    keys = jax.random.split(key, 16)
    p = {}
    p["W_in"] = xavier(keys[0], (input_sz, in_size2), input_sz, in_size2)
    p["b_in"] = jnp.zeros((1, in_size2), jnp.float32)
    p["Q"] = xavier(keys[1], (hidden_sz, in_size2), hidden_sz, in_size2)
    p["R"] = xavier(keys[2], (in_size2, hidden_sz), in_size2, hidden_sz)
    p["Wih"] = xavier(keys[3], (in_size2, 4 * hidden_sz), in_size2, 4 * hidden_sz)
    p["Whh"] = xavier(keys[4], (hidden_sz, 4 * hidden_sz), hidden_sz, 4 * hidden_sz)
    p["bih"] = jnp.zeros((1, 4 * hidden_sz), jnp.float32)
    p["bhh"] = jnp.zeros((1, 4 * hidden_sz), jnp.float32)
    for i, fsz in enumerate(filter_sizes):
        fan_in = 1 * fsz * hidden_sz
        fan_out = filter_num * fsz * hidden_sz
        p[f"conv{fsz}_w"] = xavier(keys[5 + i], (fsz, hidden_sz, filter_num),
                                   fan_in, fan_out)
        p[f"conv{fsz}_b"] = jnp.zeros((1, filter_num), jnp.float32)
    n_feat = len(filter_sizes) * filter_num
    p["lin_w"] = xavier(keys[10], (n_feat, 2), n_feat, 2)
    p["lin_b"] = jnp.zeros((1, 2), jnp.float32)
    return p


def fuse_params(p, filter_sizes, filter_num):
    """One-time weight fusion done outside the kernel."""
    H = p["Whh"].shape[0]
    fp = {
        "filter_sizes": tuple(filter_sizes),
        "filter_num": filter_num,
        "W_in": p["W_in"], "b_in": p["b_in"],
        "Q": p["Q"],
        "WR": jnp.concatenate([p["R"], p["Wih"]], axis=1),   # (D2, H + 4H)
        "Whh": p["Whh"],
        "b_gates": p["bih"] + p["bhh"],                      # (1, 4H)
        "lin_w": p["lin_w"], "lin_b": p["lin_b"],
    }
    w_blocks, b_blocks = [], []
    for fsz in filter_sizes:
        w = p[f"conv{fsz}_w"]                                # (fsz, H, F)
        # columns ordered [w[0] | w[1] | ... | w[fsz-1]]
        w_blocks.append(jnp.transpose(w, (1, 0, 2)).reshape(H, fsz * filter_num))
        b_blocks.append(p[f"conv{fsz}_b"])
    fp["W_all"] = jnp.concatenate(w_blocks, axis=1)          # (H, sum fsz*F)
    fp["b_conv"] = jnp.concatenate(b_blocks, axis=1)         # (1, len(fs)*F)
    return fp


# ----------------------------------------------------------------------------
# Pure-JAX reference for correctness check
# ----------------------------------------------------------------------------
def reference_forward(x, params, filter_sizes):
    B, S, _ = x.shape
    H = params["Whh"].shape[0]
    xp = jnp.tanh(x @ params["W_in"] + params["b_in"])
    ht = jnp.zeros((B, H), jnp.float32)
    ct = jnp.zeros((B, H), jnp.float32)
    hs = []
    for t in range(S):
        xt = xp[:, t, :]
        xt = 2.0 * jax.nn.sigmoid(ht @ params["Q"]) * xt
        ht = 2.0 * jax.nn.sigmoid(xt @ params["R"]) * ht
        gates = (xt @ params["Wih"] + params["bih"]
                 + ht @ params["Whh"] + params["bhh"])
        i, f, g, o = jnp.split(gates, 4, axis=1)
        ct = jax.nn.sigmoid(f) * ct + jax.nn.sigmoid(i) * jnp.tanh(g)
        ht = jax.nn.sigmoid(o) * jnp.tanh(ct)
        hs.append(ht)
    hs = jnp.stack(hs, axis=1)                        # (B, S, H)
    feats = []
    for fsz in filter_sizes:
        w = params[f"conv{fsz}_w"]
        b = params[f"conv{fsz}_b"]
        P = S - fsz + 1
        acc = jnp.zeros((B, P, w.shape[2]), jnp.float32)
        for k in range(fsz):
            acc = acc + jnp.einsum("bph,hf->bpf", hs[:, k:k + P, :], w[k])
        acc = jax.nn.relu(acc + b.reshape(1, 1, -1))
        feats.append(jnp.max(acc, axis=1))
    pooled = jnp.concatenate(feats, axis=1)
    return pooled @ params["lin_w"] + params["lin_b"]


if __name__ == "__main__":
    # Small shapes consistent with the module's forward():
    #   features: (batch, seq, input_sz)
    B, S = 2, 8
    input_sz, in_size2, hidden_sz = 16, 32, 8
    filter_num, filter_sizes = 3, (3, 4, 5)

    key = jax.random.PRNGKey(0)
    k_param, k_x = jax.random.split(key)
    params = init_params(k_param, input_sz, in_size2, hidden_sz,
                         filter_num, filter_sizes)
    fp = fuse_params(params, filter_sizes, filter_num)
    x = jax.random.normal(k_x, (B, S, input_sz), jnp.float32)

    out = mlog_forward(x, fp)
    out = jax.block_until_ready(out)

    ref = reference_forward(x, params, filter_sizes)
    assert out.shape == (B, 2), out.shape
    max_err = float(jnp.max(jnp.abs(out - ref)))
    assert max_err < 1e-4, f"mismatch vs reference: {max_err}"

    print("KERNEL_OK")
</pallas_src>

<mosaic_0001>
module attributes {stable_mosaic.version = 11 : i64} {
  func.func @kernel(%arg0: memref<2x8x16xf32, #tpu.memory_space<vmem>>, %arg1: memref<16x32xf32, #tpu.memory_space<vmem>>, %arg2: memref<1x32xf32, #tpu.memory_space<vmem>>, %arg3: memref<8x32xf32, #tpu.memory_space<vmem>>, %arg4: memref<32x40xf32, #tpu.memory_space<vmem>>, %arg5: memref<8x32xf32, #tpu.memory_space<vmem>>, %arg6: memref<1x32xf32, #tpu.memory_space<vmem>>, %arg7: memref<8x36xf32, #tpu.memory_space<vmem>>, %arg8: memref<1x9xf32, #tpu.memory_space<vmem>>, %arg9: memref<9x2xf32, #tpu.memory_space<vmem>>, %arg10: memref<1x2xf32, #tpu.memory_space<vmem>>, %arg11: memref<2x2xf32, #tpu.memory_space<vmem>>, %arg12: memref<8x2x8xf32, #tpu.memory_space<vmem>>) attributes {dimension_semantics = [], scalar_prefetch = 0 : i64, scratch_operands = 1 : i64, tpu.core_type = #tpu.core_type<tc>} {
    %c0 = arith.constant 0 : index
    %c0_0 = arith.constant 0 : index
    %c0_1 = arith.constant 0 : index
    %0 = vector.load %arg0[%c0, %c0_0, %c0_1] : memref<2x8x16xf32, #tpu.memory_space<vmem>>, vector<2x8x16xf32>
    %1 = vector.shape_cast %0 : vector<2x8x16xf32> to vector<16x16xf32>
    %c0_2 = arith.constant 0 : index
    %c0_3 = arith.constant 0 : index
    %2 = vector.load %arg1[%c0_2, %c0_3] : memref<16x32xf32, #tpu.memory_space<vmem>>, vector<16x32xf32>
    %cst = arith.constant dense<0.000000e+00> : vector<16x32xf32>
    %3 = tpu.matmul %1, %2, %cst {dimension_numbers = #tpu.dot_dimension_numbers<[1], [0], [0], [1], [0, 0, 1, 1], [], []>} : vector<16x16xf32>, vector<16x32xf32>, vector<16x32xf32> -> vector<16x32xf32>
    %c0_4 = arith.constant 0 : index
    %c0_5 = arith.constant 0 : index
    %4 = vector.load %arg2[%c0_4, %c0_5] : memref<1x32xf32, #tpu.memory_space<vmem>>, vector<1x32xf32>
    %5 = vector.broadcast %4 : vector<1x32xf32> to vector<16x32xf32>
    %6 = arith.addf %3, %5 : vector<16x32xf32>
    %7 = math.tanh %6 : vector<16x32xf32>
    %8 = vector.shape_cast %7 : vector<16x32xf32> to vector<2x8x32xf32>
    %c0_6 = arith.constant 0 : index
    %c0_7 = arith.constant 0 : index
    %9 = vector.load %arg3[%c0_6, %c0_7] : memref<8x32xf32, #tpu.memory_space<vmem>>, vector<8x32xf32>
    %c0_8 = arith.constant 0 : index
    %c0_9 = arith.constant 0 : index
    %10 = vector.load %arg4[%c0_8, %c0_9] : memref<32x40xf32, #tpu.memory_space<vmem>>, vector<32x40xf32>
    %c0_10 = arith.constant 0 : index
    %c0_11 = arith.constant 0 : index
    %11 = vector.load %arg5[%c0_10, %c0_11] : memref<8x32xf32, #tpu.memory_space<vmem>>, vector<8x32xf32>
    %c0_12 = arith.constant 0 : index
    %c0_13 = arith.constant 0 : index
    %12 = vector.load %arg6[%c0_12, %c0_13] : memref<1x32xf32, #tpu.memory_space<vmem>>, vector<1x32xf32>
    %cst_14 = arith.constant 0.000000e+00 : f32
    %13 = vector.broadcast %cst_14 : f32 to vector<2x8xf32>
    %cst_15 = arith.constant 0.000000e+00 : f32
    %14 = vector.broadcast %cst_15 : f32 to vector<2x8xf32>
    %15 = vector.extract_strided_slice %8 {offsets = [0, 0, 0], sizes = [2, 1, 32], strides = [1, 1, 1]} : vector<2x8x32xf32> to vector<2x1x32xf32>
    %16 = vector.shape_cast %15 : vector<2x1x32xf32> to vector<2x32xf32>
    %cst_16 = arith.constant dense<0.000000e+00> : vector<2x32xf32>
    %17 = tpu.matmul %13, %9, %cst_16 {dimension_numbers = #tpu.dot_dimension_numbers<[1], [0], [0], [1], [0, 0, 1, 1], [], []>} : vector<2x8xf32>, vector<8x32xf32>, vector<2x32xf32> -> vector<2x32xf32>
    %18 = arith.negf %17 : vector<2x32xf32>
    %19 = math.exp %18 : vector<2x32xf32>
    %cst_17 = arith.constant 1.000000e+00 : f32
    %20 = vector.broadcast %cst_17 : f32 to vector<2x32xf32>
    %21 = arith.addf %20, %19 : vector<2x32xf32>
    %22 = arith.divf %20, %21 : vector<2x32xf32>
    %cst_18 = arith.constant 2.000000e+00 : f32
    %23 = vector.broadcast %cst_18 : f32 to vector<2x32xf32>
    %24 = arith.mulf %23, %22 : vector<2x32xf32>
    %25 = arith.mulf %24, %16 : vector<2x32xf32>
    %cst_19 = arith.constant dense<0.000000e+00> : vector<2x40xf32>
    %26 = tpu.matmul %25, %10, %cst_19 {dimension_numbers = #tpu.dot_dimension_numbers<[1], [0], [0], [1], [0, 0, 1, 1], [], []>} : vector<2x32xf32>, vector<32x40xf32>, vector<2x40xf32> -> vector<2x40xf32>
    %27 = vector.extract_strided_slice %26 {offsets = [0, 0], sizes = [2, 8], strides = [1, 1]} : vector<2x40xf32> to vector<2x8xf32>
    %28 = arith.negf %27 : vector<2x8xf32>
    %29 = math.exp %28 : vector<2x8xf32>
    %cst_20 = arith.constant 1.000000e+00 : f32
    %30 = vector.broadcast %cst_20 : f32 to vector<2x8xf32>
    %31 = arith.addf %30, %29 : vector<2x8xf32>
    %32 = arith.divf %30, %31 : vector<2x8xf32>
    %cst_21 = arith.constant 2.000000e+00 : f32
    %33 = vector.broadcast %cst_21 : f32 to vector<2x8xf32>
    %34 = arith.mulf %33, %32 : vector<2x8xf32>
    %35 = arith.mulf %34, %13 : vector<2x8xf32>
    %36 = vector.extract_strided_slice %26 {offsets = [0, 8], sizes = [2, 32], strides = [1, 1]} : vector<2x40xf32> to vector<2x32xf32>
    %cst_22 = arith.constant dense<0.000000e+00> : vector<2x32xf32>
    %37 = tpu.matmul %35, %11, %cst_22 {dimension_numbers = #tpu.dot_dimension_numbers<[1], [0], [0], [1], [0, 0, 1, 1], [], []>} : vector<2x8xf32>, vector<8x32xf32>, vector<2x32xf32> -> vector<2x32xf32>
    %38 = arith.addf %36, %37 : vector<2x32xf32>
    %39 = vector.broadcast %12 : vector<1x32xf32> to vector<2x32xf32>
    %40 = arith.addf %38, %39 : vector<2x32xf32>
    %41 = vector.extract_strided_slice %40 {offsets = [0, 0], sizes = [2, 8], strides = [1, 1]} : vector<2x32xf32> to vector<2x8xf32>
    %42 = arith.negf %41 : vector<2x8xf32>
    %43 = math.exp %42 : vector<2x8xf32>
    %cst_23 = arith.constant 1.000000e+00 : f32
    %44 = vector.broadcast %cst_23 : f32 to vector<2x8xf32>
    %45 = arith.addf %44, %43 : vector<2x8xf32>
    %46 = arith.divf %44, %45 : vector<2x8xf32>
    %47 = vector.extract_strided_slice %40 {offsets = [0, 8], sizes = [2, 8], strides = [1, 1]} : vector<2x32xf32> to vector<2x8xf32>
    %48 = arith.negf %47 : vector<2x8xf32>
    %49 = math.exp %48 : vector<2x8xf32>
    %cst_24 = arith.constant 1.000000e+00 : f32
    %50 = vector.broadcast %cst_24 : f32 to vector<2x8xf32>
    %51 = arith.addf %50, %49 : vector<2x8xf32>
    %52 = arith.divf %50, %51 : vector<2x8xf32>
    %53 = vector.extract_strided_slice %40 {offsets = [0, 16], sizes = [2, 8], strides = [1, 1]} : vector<2x32xf32> to vector<2x8xf32>
    %54 = math.tanh %53 : vector<2x8xf32>
    %55 = vector.extract_strided_slice %40 {offsets = [0, 24], sizes = [2, 8], strides = [1, 1]} : vector<2x32xf32> to vector<2x8xf32>
    %56 = arith.negf %55 : vector<2x8xf32>
    %57 = math.exp %56 : vector<2x8xf32>
    %cst_25 = arith.constant 1.000000e+00 : f32
    %58 = vector.broadcast %cst_25 : f32 to vector<2x8xf32>
    %59 = arith.addf %58, %57 : vector<2x8xf32>
    %60 = arith.divf %58, %59 : vector<2x8xf32>
    %61 = arith.mulf %52, %14 : vector<2x8xf32>
    %62 = arith.mulf %46, %54 : vector<2x8xf32>
    %63 = arith.addf %61, %62 : vector<2x8xf32>
    %64 = math.tanh %63 : vector<2x8xf32>
    %65 = arith.mulf %60, %64 : vector<2x8xf32>
    %c0_26 = arith.constant 0 : index
    %c0_27 = arith.constant 0 : index
    %c0_28 = arith.constant 0 : index
    %66 = vector.load %arg12[%c0_26, %c0_27, %c0_28] : memref<8x2x8xf32, #tpu.memory_space<vmem>>, vector<1x2x8xf32>
    %67 = vector.shape_cast %66 : vector<1x2x8xf32> to vector<2x8xf32>
    %68 = vector.shape_cast %65 : vector<2x8xf32> to vector<1x2x8xf32>
    tpu.vector_store %arg12[%c0_26, %c0_27, %c0_28], %68 {strides = array<i32>} : memref<8x2x8xf32, #tpu.memory_space<vmem>>, vector<1x2x8xf32>,
    %69 = vector.extract_strided_slice %8 {offsets = [0, 1, 0], sizes = [2, 1, 32], strides = [1, 1, 1]} : vector<2x8x32xf32> to vector<2x1x32xf32>
    %70 = vector.shape_cast %69 : vector<2x1x32xf32> to vector<2x32xf32>
    %cst_29 = arith.constant dense<0.000000e+00> : vector<2x32xf32>
    %71 = tpu.matmul %65, %9, %cst_29 {dimension_numbers = #tpu.dot_dimension_numbers<[1], [0], [0], [1], [0, 0, 1, 1], [], []>} : vector<2x8xf32>, vector<8x32xf32>, vector<2x32xf32> -> vector<2x32xf32>
    %72 = arith.negf %71 : vector<2x32xf32>
    %73 = math.exp %72 : vector<2x32xf32>
    %cst_30 = arith.constant 1.000000e+00 : f32
    %74 = vector.broadcast %cst_30 : f32 to vector<2x32xf32>
    %75 = arith.addf %74, %73 : vector<2x32xf32>
    %76 = arith.divf %74, %75 : vector<2x32xf32>
    %cst_31 = arith.constant 2.000000e+00 : f32
    %77 = vector.broadcast %cst_31 : f32 to vector<2x32xf32>
    %78 = arith.mulf %77, %76 : vector<2x32xf32>
    %79 = arith.mulf %78, %70 : vector<2x32xf32>
    %cst_32 = arith.constant dense<0.000000e+00> : vector<2x40xf32>
    %80 = tpu.matmul %79, %10, %cst_32 {dimension_numbers = #tpu.dot_dimension_numbers<[1], [0], [0], [1], [0, 0, 1, 1], [], []>} : vector<2x32xf32>, vector<32x40xf32>, vector<2x40xf32> -> vector<2x40xf32>
    %81 = vector.extract_strided_slice %80 {offsets = [0, 0], sizes = [2, 8], strides = [1, 1]} : vector<2x40xf32> to vector<2x8xf32>
    %82 = arith.negf %81 : vector<2x8xf32>
    %83 = math.exp %82 : vector<2x8xf32>
    %cst_33 = arith.constant 1.000000e+00 : f32
    %84 = vector.broadcast %cst_33 : f32 to vector<2x8xf32>
    %85 = arith.addf %84, %83 : vector<2x8xf32>
    %86 = arith.divf %84, %85 : vector<2x8xf32>
    %cst_34 = arith.constant 2.000000e+00 : f32
    %87 = vector.broadcast %cst_34 : f32 to vector<2x8xf32>
    %88 = arith.mulf %87, %86 : vector<2x8xf32>
    %89 = arith.mulf %88, %65 : vector<2x8xf32>
    %90 = vector.extract_strided_slice %80 {offsets = [0, 8], sizes = [2, 32], strides = [1, 1]} : vector<2x40xf32> to vector<2x32xf32>
    %cst_35 = arith.constant dense<0.000000e+00> : vector<2x32xf32>
    %91 = tpu.matmul %89, %11, %cst_35 {dimension_numbers = #tpu.dot_dimension_numbers<[1], [0], [0], [1], [0, 0, 1, 1], [], []>} : vector<2x8xf32>, vector<8x32xf32>, vector<2x32xf32> -> vector<2x32xf32>
    %92 = arith.addf %90, %91 : vector<2x32xf32>
    %93 = vector.broadcast %12 : vector<1x32xf32> to vector<2x32xf32>
    %94 = arith.addf %92, %93 : vector<2x32xf32>
    %95 = vector.extract_strided_slice %94 {offsets = [0, 0], sizes = [2, 8], strides = [1, 1]} : vector<2x32xf32> to vector<2x8xf32>
    %96 = arith.negf %95 : vector<2x8xf32>
    %97 = math.exp %96 : vector<2x8xf32>
    %cst_36 = arith.constant 1.000000e+00 : f32
    %98 = vector.broadcast %cst_36 : f32 to vector<2x8xf32>
    %99 = arith.addf %98, %97 : vector<2x8xf32>
    %100 = arith.divf %98, %99 : vector<2x8xf32>
    %101 = vector.extract_strided_slice %94 {offsets = [0, 8], sizes = [2, 8], strides = [1, 1]} : vector<2x32xf32> to vector<2x8xf32>
    %102 = arith.negf %101 : vector<2x8xf32>
    %103 = math.exp %102 : vector<2x8xf32>
    %cst_37 = arith.constant 1.000000e+00 : f32
    %104 = vector.broadcast %cst_37 : f32 to vector<2x8xf32>
    %105 = arith.addf %104, %103 : vector<2x8xf32>
    %106 = arith.divf %104, %105 : vector<2x8xf32>
    %107 = vector.extract_strided_slice %94 {offsets = [0, 16], sizes = [2, 8], strides = [1, 1]} : vector<2x32xf32> to vector<2x8xf32>
    %108 = math.tanh %107 : vector<2x8xf32>
    %109 = vector.extract_strided_slice %94 {offsets = [0, 24], sizes = [2, 8], strides = [1, 1]} : vector<2x32xf32> to vector<2x8xf32>
    %110 = arith.negf %109 : vector<2x8xf32>
    %111 = math.exp %110 : vector<2x8xf32>
    %cst_38 = arith.constant 1.000000e+00 : f32
    %112 = vector.broadcast %cst_38 : f32 to vector<2x8xf32>
    %113 = arith.addf %112, %111 : vector<2x8xf32>
    %114 = arith.divf %112, %113 : vector<2x8xf32>
    %115 = arith.mulf %106, %63 : vector<2x8xf32>
    %116 = arith.mulf %100, %108 : vector<2x8xf32>
    %117 = arith.addf %115, %116 : vector<2x8xf32>
    %118 = math.tanh %117 : vector<2x8xf32>
    %119 = arith.mulf %114, %118 : vector<2x8xf32>
    %c1 = arith.constant 1 : index
    %c0_39 = arith.constant 0 : index
    %c0_40 = arith.constant 0 : index
    %120 = vector.load %arg12[%c1, %c0_39, %c0_40] : memref<8x2x8xf32, #tpu.memory_space<vmem>>, vector<1x2x8xf32>
    %121 = vector.shape_cast %120 : vector<1x2x8xf32> to vector<2x8xf32>
    %122 = vector.shape_cast %119 : vector<2x8xf32> to vector<1x2x8xf32>
    tpu.vector_store %arg12[%c1, %c0_39, %c0_40], %122 {strides = array<i32>} : memref<8x2x8xf32, #tpu.memory_space<vmem>>, vector<1x2x8xf32>,
    %123 = vector.extract_strided_slice %8 {offsets = [0, 2, 0], sizes = [2, 1, 32], strides = [1, 1, 1]} : vector<2x8x32xf32> to vector<2x1x32xf32>
    %124 = vector.shape_cast %123 : vector<2x1x32xf32> to vector<2x32xf32>
    %cst_41 = arith.constant dense<0.000000e+00> : vector<2x32xf32>
    %125 = tpu.matmul %119, %9, %cst_41 {dimension_numbers = #tpu.dot_dimension_numbers<[1], [0], [0], [1], [0, 0, 1, 1], [], []>} : vector<2x8xf32>, vector<8x32xf32>, vector<2x32xf32> -> vector<2x32xf32>
    %126 = arith.negf %125 : vector<2x32xf32>
    %127 = math.exp %126 : vector<2x32xf32>
    %cst_42 = arith.constant 1.000000e+00 : f32
    %128 = vector.broadcast %cst_42 : f32 to vector<2x32xf32>
    %129 = arith.addf %128, %127 : vector<2x32xf32>
    %130 = arith.divf %128, %129 : vector<2x32xf32>
    %cst_43 = arith.constant 2.000000e+00 : f32
    %131 = vector.broadcast %cst_43 : f32 to vector<2x32xf32>
    %132 = arith.mulf %131, %130 : vector<2x32xf32>
    %133 = arith.mulf %132, %124 : vector<2x32xf32>
    %cst_44 = arith.constant dense<0.000000e+00> : vector<2x40xf32>
    %134 = tpu.matmul %133, %10, %cst_44 {dimension_numbers = #tpu.dot_dimension_numbers<[1], [0], [0], [1], [0, 0, 1, 1], [], []>} : vector<2x32xf32>, vector<32x40xf32>, vector<2x40xf32> -> vector<2x40xf32>
    %135 = vector.extract_strided_slice %134 {offsets = [0, 0], sizes = [2, 8], strides = [1, 1]} : vector<2x40xf32> to vector<2x8xf32>
    %136 = arith.negf %135 : vector<2x8xf32>
    %137 = math.exp %136 : vector<2x8xf32>
    %cst_45 = arith.constant 1.000000e+00 : f32
    %138 = vector.broadcast %cst_45 : f32 to vector<2x8xf32>
    %139 = arith.addf %138, %137 : vector<2x8xf32>
    %140 = arith.divf %138, %139 : vector<2x8xf32>
    %cst_46 = arith.constant 2.000000e+00 : f32
    %141 = vector.broadcast %cst_46 : f32 to vector<2x8xf32>
    %142 = arith.mulf %141, %140 : vector<2x8xf32>
    %143 = arith.mulf %142, %119 : vector<2x8xf32>
    %144 = vector.extract_strided_slice %134 {offsets = [0, 8], sizes = [2, 32], strides = [1, 1]} : vector<2x40xf32> to vector<2x32xf32>
    %cst_47 = arith.constant dense<0.000000e+00> : vector<2x32xf32>
    %145 = tpu.matmul %143, %11, %cst_47 {dimension_numbers = #tpu.dot_dimension_numbers<[1], [0], [0], [1], [0, 0, 1, 1], [], []>} : vector<2x8xf32>, vector<8x32xf32>, vector<2x32xf32> -> vector<2x32xf32>
    %146 = arith.addf %144, %145 : vector<2x32xf32>
    %147 = vector.broadcast %12 : vector<1x32xf32> to vector<2x32xf32>
    %148 = arith.addf %146, %147 : vector<2x32xf32>
    %149 = vector.extract_strided_slice %148 {offsets = [0, 0], sizes = [2, 8], strides = [1, 1]} : vector<2x32xf32> to vector<2x8xf32>
    %150 = arith.negf %149 : vector<2x8xf32>
    %151 = math.exp %150 : vector<2x8xf32>
    %cst_48 = arith.constant 1.000000e+00 : f32
    %152 = vector.broadcast %cst_48 : f32 to vector<2x8xf32>
    %153 = arith.addf %152, %151 : vector<2x8xf32>
    %154 = arith.divf %152, %153 : vector<2x8xf32>
    %155 = vector.extract_strided_slice %148 {offsets = [0, 8], sizes = [2, 8], strides = [1, 1]} : vector<2x32xf32> to vector<2x8xf32>
    %156 = arith.negf %155 : vector<2x8xf32>
    %157 = math.exp %156 : vector<2x8xf32>
    %cst_49 = arith.constant 1.000000e+00 : f32
    %158 = vector.broadcast %cst_49 : f32 to vector<2x8xf32>
    %159 = arith.addf %158, %157 : vector<2x8xf32>
    %160 = arith.divf %158, %159 : vector<2x8xf32>
    %161 = vector.extract_strided_slice %148 {offsets = [0, 16], sizes = [2, 8], strides = [1, 1]} : vector<2x32xf32> to vector<2x8xf32>
    %162 = math.tanh %161 : vector<2x8xf32>
    %163 = vector.extract_strided_slice %148 {offsets = [0, 24], sizes = [2, 8], strides = [1, 1]} : vector<2x32xf32> to vector<2x8xf32>
    %164 = arith.negf %163 : vector<2x8xf32>
    %165 = math.exp %164 : vector<2x8xf32>
    %cst_50 = arith.constant 1.000000e+00 : f32
    %166 = vector.broadcast %cst_50 : f32 to vector<2x8xf32>
    %167 = arith.addf %166, %165 : vector<2x8xf32>
    %168 = arith.divf %166, %167 : vector<2x8xf32>
    %169 = arith.mulf %160, %117 : vector<2x8xf32>
    %170 = arith.mulf %154, %162 : vector<2x8xf32>
    %171 = arith.addf %169, %170 : vector<2x8xf32>
    %172 = math.tanh %171 : vector<2x8xf32>
    %173 = arith.mulf %168, %172 : vector<2x8xf32>
    %c2 = arith.constant 2 : index
    %c0_51 = arith.constant 0 : index
    %c0_52 = arith.constant 0 : index
    %174 = vector.load %arg12[%c2, %c0_51, %c0_52] : memref<8x2x8xf32, #tpu.memory_space<vmem>>, vector<1x2x8xf32>
    %175 = vector.shape_cast %174 : vector<1x2x8xf32> to vector<2x8xf32>
    %176 = vector.shape_cast %173 : vector<2x8xf32> to vector<1x2x8xf32>
    tpu.vector_store %arg12[%c2, %c0_51, %c0_52], %176 {strides = array<i32>} : memref<8x2x8xf32, #tpu.memory_space<vmem>>, vector<1x2x8xf32>,
    %177 = vector.extract_strided_slice %8 {offsets = [0, 3, 0], sizes = [2, 1, 32], strides = [1, 1, 1]} : vector<2x8x32xf32> to vector<2x1x32xf32>
    %178 = vector.shape_cast %177 : vector<2x1x32xf32> to vector<2x32xf32>
    %cst_53 = arith.constant dense<0.000000e+00> : vector<2x32xf32>
    %179 = tpu.matmul %173, %9, %cst_53 {dimension_numbers = #tpu.dot_dimension_numbers<[1], [0], [0], [1], [0, 0, 1, 1], [], []>} : vector<2x8xf32>, vector<8x32xf32>, vector<2x32xf32> -> vector<2x32xf32>
    %180 = arith.negf %179 : vector<2x32xf32>
    %181 = math.exp %180 : vector<2x32xf32>
    %cst_54 = arith.constant 1.000000e+00 : f32
    %182 = vector.broadcast %cst_54 : f32 to vector<2x32xf32>
    %183 = arith.addf %182, %181 : vector<2x32xf32>
    %184 = arith.divf %182, %183 : vector<2x32xf32>
    %cst_55 = arith.constant 2.000000e+00 : f32
    %185 = vector.broadcast %cst_55 : f32 to vector<2x32xf32>
    %186 = arith.mulf %185, %184 : vector<2x32xf32>
    %187 = arith.mulf %186, %178 : vector<2x32xf32>
    %cst_56 = arith.constant dense<0.000000e+00> : vector<2x40xf32>
    %188 = tpu.matmul %187, %10, %cst_56 {dimension_numbers = #tpu.dot_dimension_numbers<[1], [0], [0], [1], [0, 0, 1, 1], [], []>} : vector<2x32xf32>, vector<32x40xf32>, vector<2x40xf32> -> vector<2x40xf32>
    %189 = vector.extract_strided_slice %188 {offsets = [0, 0], sizes = [2, 8], strides = [1, 1]} : vector<2x40xf32> to vector<2x8xf32>
    %190 = arith.negf %189 : vector<2x8xf32>
    %191 = math.exp %190 : vector<2x8xf32>
    %cst_57 = arith.constant 1.000000e+00 : f32
    %192 = vector.broadcast %cst_57 : f32 to vector<2x8xf32>
    %193 = arith.addf %192, %191 : vector<2x8xf32>
    %194 = arith.divf %192, %193 : vector<2x8xf32>
    %cst_58 = arith.constant 2.000000e+00 : f32
    %195 = vector.broadcast %cst_58 : f32 to vector<2x8xf32>
    %196 = arith.mulf %195, %194 : vector<2x8xf32>
    %197 = arith.mulf %196, %173 : vector<2x8xf32>
    %198 = vector.extract_strided_slice %188 {offsets = [0, 8], sizes = [2, 32], strides = [1, 1]} : vector<2x40xf32> to vector<2x32xf32>
    %cst_59 = arith.constant dense<0.000000e+00> : vector<2x32xf32>
    %199 = tpu.matmul %197, %11, %cst_59 {dimension_numbers = #tpu.dot_dimension_numbers<[1], [0], [0], [1], [0, 0, 1, 1], [], []>} : vector<2x8xf32>, vector<8x32xf32>, vector<2x32xf32> -> vector<2x32xf32>
    %200 = arith.addf %198, %199 : vector<2x32xf32>
    %201 = vector.broadcast %12 : vector<1x32xf32> to vector<2x32xf32>
    %202 = arith.addf %200, %201 : vector<2x32xf32>
    %203 = vector.extract_strided_slice %202 {offsets = [0, 0], sizes = [2, 8], strides = [1, 1]} : vector<2x32xf32> to vector<2x8xf32>
    %204 = arith.negf %203 : vector<2x8xf32>
    %205 = math.exp %204 : vector<2x8xf32>
    %cst_60 = arith.constant 1.000000e+00 : f32
    %206 = vector.broadcast %cst_60 : f32 to vector<2x8xf32>
    %207 = arith.addf %206, %205 : vector<2x8xf32>
    %208 = arith.divf %206, %207 : vector<2x8xf32>
    %209 = vector.extract_strided_slice %202 {offsets = [0, 8], sizes = [2, 8], strides = [1, 1]} : vector<2x32xf32> to vector<2x8xf32>
    %210 = arith.negf %209 : vector<2x8xf32>
    %211 = math.exp %210 : vector<2x8xf32>
    %cst_61 = arith.constant 1.000000e+00 : f32
    %212 = vector.broadcast %cst_61 : f32 to vector<2x8xf32>
    %213 = arith.addf %212, %211 : vector<2x8xf32>
    %214 = arith.divf %212, %213 : vector<2x8xf32>
    %215 = vector.extract_strided_slice %202 {offsets = [0, 16], sizes = [2, 8], strides = [1, 1]} : vector<2x32xf32> to vector<2x8xf32>
    %216 = math.tanh %215 : vector<2x8xf32>
    %217 = vector.extract_strided_slice %202 {offsets = [0, 24], sizes = [2, 8], strides = [1, 1]} : vector<2x32xf32> to vector<2x8xf32>
    %218 = arith.negf %217 : vector<2x8xf32>
    %219 = math.exp %218 : vector<2x8xf32>
    %cst_62 = arith.constant 1.000000e+00 : f32
    %220 = vector.broadcast %cst_62 : f32 to vector<2x8xf32>
    %221 = arith.addf %220, %219 : vector<2x8xf32>
    %222 = arith.divf %220, %221 : vector<2x8xf32>
    %223 = arith.mulf %214, %171 : vector<2x8xf32>
    %224 = arith.mulf %208, %216 : vector<2x8xf32>
    %225 = arith.addf %223, %224 : vector<2x8xf32>
    %226 = math.tanh %225 : vector<2x8xf32>
    %227 = arith.mulf %222, %226 : vector<2x8xf32>
    %c3 = arith.constant 3 : index
    %c0_63 = arith.constant 0 : index
    %c0_64 = arith.constant 0 : index
    %228 = vector.load %arg12[%c3, %c0_63, %c0_64] : memref<8x2x8xf32, #tpu.memory_space<vmem>>, vector<1x2x8xf32>
    %229 = vector.shape_cast %228 : vector<1x2x8xf32> to vector<2x8xf32>
    %230 = vector.shape_cast %227 : vector<2x8xf32> to vector<1x2x8xf32>
    tpu.vector_store %arg12[%c3, %c0_63, %c0_64], %230 {strides = array<i32>} : memref<8x2x8xf32, #tpu.memory_space<vmem>>, vector<1x2x8xf32>,
    %231 = vector.extract_strided_slice %8 {offsets = [0, 4, 0], sizes = [2, 1, 32], strides = [1, 1, 1]} : vector<2x8x32xf32> to vector<2x1x32xf32>
    %232 = vector.shape_cast %231 : vector<2x1x32xf32> to vector<2x32xf32>
    %cst_65 = arith.constant dense<0.000000e+00> : vector<2x32xf32>
    %233 = tpu.matmul %227, %9, %cst_65 {dimension_numbers = #tpu.dot_dimension_numbers<[1], [0], [0], [1], [0, 0, 1, 1], [], []>} : vector<2x8xf32>, vector<8x32xf32>, vector<2x32xf32> -> vector<2x32xf32>
    %234 = arith.negf %233 : vector<2x32xf32>
    %235 = math.exp %234 : vector<2x32xf32>
    %cst_66 = arith.constant 1.000000e+00 : f32
    %236 = vector.broadcast %cst_66 : f32 to vector<2x32xf32>
    %237 = arith.addf %236, %235 : vector<2x32xf32>
    %238 = arith.divf %236, %237 : vector<2x32xf32>
    %cst_67 = arith.constant 2.000000e+00 : f32
    %239 = vector.broadcast %cst_67 : f32 to vector<2x32xf32>
    %240 = arith.mulf %239, %238 : vector<2x32xf32>
    %241 = arith.mulf %240, %232 : vector<2x32xf32>
    %cst_68 = arith.constant dense<0.000000e+00> : vector<2x40xf32>
    %242 = tpu.matmul %241, %10, %cst_68 {dimension_numbers = #tpu.dot_dimension_numbers<[1], [0], [0], [1], [0, 0, 1, 1], [], []>} : vector<2x32xf32>, vector<32x40xf32>, vector<2x40xf32> -> vector<2x40xf32>
    %243 = vector.extract_strided_slice %242 {offsets = [0, 0], sizes = [2, 8], strides = [1, 1]} : vector<2x40xf32> to vector<2x8xf32>
    %244 = arith.negf %243 : vector<2x8xf32>
    %245 = math.exp %244 : vector<2x8xf32>
    %cst_69 = arith.constant 1.000000e+00 : f32
    %246 = vector.broadcast %cst_69 : f32 to vector<2x8xf32>
    %247 = arith.addf %246, %245 : vector<2x8xf32>
    %248 = arith.divf %246, %247 : vector<2x8xf32>
    %cst_70 = arith.constant 2.000000e+00 : f32
    %249 = vector.broadcast %cst_70 : f32 to vector<2x8xf32>
    %250 = arith.mulf %249, %248 : vector<2x8xf32>
    %251 = arith.mulf %250, %227 : vector<2x8xf32>
    %252 = vector.extract_strided_slice %242 {offsets = [0, 8], sizes = [2, 32], strides = [1, 1]} : vector<2x40xf32> to vector<2x32xf32>
    %cst_71 = arith.constant dense<0.000000e+00> : vector<2x32xf32>
    %253 = tpu.matmul %251, %11, %cst_71 {dimension_numbers = #tpu.dot_dimension_numbers<[1], [0], [0], [1], [0, 0, 1, 1], [], []>} : vector<2x8xf32>, vector<8x32xf32>, vector<2x32xf32> -> vector<2x32xf32>
    %254 = arith.addf %252, %253 : vector<2x32xf32>
    %255 = vector.broadcast %12 : vector<1x32xf32> to vector<2x32xf32>
    %256 = arith.addf %254, %255 : vector<2x32xf32>
    %257 = vector.extract_strided_slice %256 {offsets = [0, 0], sizes = [2, 8], strides = [1, 1]} : vector<2x32xf32> to vector<2x8xf32>
    %258 = arith.negf %257 : vector<2x8xf32>
    %259 = math.exp %258 : vector<2x8xf32>
    %cst_72 = arith.constant 1.000000e+00 : f32
    %260 = vector.broadcast %cst_72 : f32 to vector<2x8xf32>
    %261 = arith.addf %260, %259 : vector<2x8xf32>
    %262 = arith.divf %260, %261 : vector<2x8xf32>
    %263 = vector.extract_strided_slice %256 {offsets = [0, 8], sizes = [2, 8], strides = [1, 1]} : vector<2x32xf32> to vector<2x8xf32>
    %264 = arith.negf %263 : vector<2x8xf32>
    %265 = math.exp %264 : vector<2x8xf32>
    %cst_73 = arith.constant 1.000000e+00 : f32
    %266 = vector.broadcast %cst_73 : f32 to vector<2x8xf32>
    %267 = arith.addf %266, %265 : vector<2x8xf32>
    %268 = arith.divf %266, %267 : vector<2x8xf32>
    %269 = vector.extract_strided_slice %256 {offsets = [0, 16], sizes = [2, 8], strides = [1, 1]} : vector<2x32xf32> to vector<2x8xf32>
    %270 = math.tanh %269 : vector<2x8xf32>
    %271 = vector.extract_strided_slice %256 {offsets = [0, 24], sizes = [2, 8], strides = [1, 1]} : vector<2x32xf32> to vector<2x8xf32>
    %272 = arith.negf %271 : vector<2x8xf32>
    %273 = math.exp %272 : vector<2x8xf32>
    %cst_74 = arith.constant 1.000000e+00 : f32
    %274 = vector.broadcast %cst_74 : f32 to vector<2x8xf32>
    %275 = arith.addf %274, %273 : vector<2x8xf32>
    %276 = arith.divf %274, %275 : vector<2x8xf32>
    %277 = arith.mulf %268, %225 : vector<2x8xf32>
    %278 = arith.mulf %262, %270 : vector<2x8xf32>
    %279 = arith.addf %277, %278 : vector<2x8xf32>
    %280 = math.tanh %279 : vector<2x8xf32>
    %281 = arith.mulf %276, %280 : vector<2x8xf32>
    %c4 = arith.constant 4 : index
    %c0_75 = arith.constant 0 : index
    %c0_76 = arith.constant 0 : index
    %282 = vector.load %arg12[%c4, %c0_75, %c0_76] : memref<8x2x8xf32, #tpu.memory_space<vmem>>, vector<1x2x8xf32>
    %283 = vector.shape_cast %282 : vector<1x2x8xf32> to vector<2x8xf32>
    %284 = vector.shape_cast %281 : vector<2x8xf32> to vector<1x2x8xf32>
    tpu.vector_store %arg12[%c4, %c0_75, %c0_76], %284 {strides = array<i32>} : memref<8x2x8xf32, #tpu.memory_space<vmem>>, vector<1x2x8xf32>,
    %285 = vector.extract_strided_slice %8 {offsets = [0, 5, 0], sizes = [2, 1, 32], strides = [1, 1, 1]} : vector<2x8x32xf32> to vector<2x1x32xf32>
    %286 = vector.shape_cast %285 : vector<2x1x32xf32> to vector<2x32xf32>
    %cst_77 = arith.constant dense<0.000000e+00> : vector<2x32xf32>
    %287 = tpu.matmul %281, %9, %cst_77 {dimension_numbers = #tpu.dot_dimension_numbers<[1], [0], [0], [1], [0, 0, 1, 1], [], []>} : vector<2x8xf32>, vector<8x32xf32>, vector<2x32xf32> -> vector<2x32xf32>
    %288 = arith.negf %287 : vector<2x32xf32>
    %289 = math.exp %288 : vector<2x32xf32>
    %cst_78 = arith.constant 1.000000e+00 : f32
    %290 = vector.broadcast %cst_78 : f32 to vector<2x32xf32>
    %291 = arith.addf %290, %289 : vector<2x32xf32>
    %292 = arith.divf %290, %291 : vector<2x32xf32>
    %cst_79 = arith.constant 2.000000e+00 : f32
    %293 = vector.broadcast %cst_79 : f32 to vector<2x32xf32>
    %294 = arith.mulf %293, %292 : vector<2x32xf32>
    %295 = arith.mulf %294, %286 : vector<2x32xf32>
    %cst_80 = arith.constant dense<0.000000e+00> : vector<2x40xf32>
    %296 = tpu.matmul %295, %10, %cst_80 {dimension_numbers = #tpu.dot_dimension_numbers<[1], [0], [0], [1], [0, 0, 1, 1], [], []>} : vector<2x32xf32>, vector<32x40xf32>, vector<2x40xf32> -> vector<2x40xf32>
    %297 = vector.extract_strided_slice %296 {offsets = [0, 0], sizes = [2, 8], strides = [1, 1]} : vector<2x40xf32> to vector<2x8xf32>
    %298 = arith.negf %297 : vector<2x8xf32>
    %299 = math.exp %298 : vector<2x8xf32>
    %cst_81 = arith.constant 1.000000e+00 : f32
    %300 = vector.broadcast %cst_81 : f32 to vector<2x8xf32>
    %301 = arith.addf %300, %299 : vector<2x8xf32>
    %302 = arith.divf %300, %301 : vector<2x8xf32>
    %cst_82 = arith.constant 2.000000e+00 : f32
    %303 = vector.broadcast %cst_82 : f32 to vector<2x8xf32>
    %304 = arith.mulf %303, %302 : vector<2x8xf32>
    %305 = arith.mulf %304, %281 : vector<2x8xf32>
    %306 = vector.extract_strided_slice %296 {offsets = [0, 8], sizes = [2, 32], strides = [1, 1]} : vector<2x40xf32> to vector<2x32xf32>
    %cst_83 = arith.constant dense<0.000000e+00> : vector<2x32xf32>
    %307 = tpu.matmul %305, %11, %cst_83 {dimension_numbers = #tpu.dot_dimension_numbers<[1], [0], [0], [1], [0, 0, 1, 1], [], []>} : vector<2x8xf32>, vector<8x32xf32>, vector<2x32xf32> -> vector<2x32xf32>
    %308 = arith.addf %306, %307 : vector<2x32xf32>
    %309 = vector.broadcast %12 : vector<1x32xf32> to vector<2x32xf32>
    %310 = arith.addf %308, %309 : vector<2x32xf32>
    %311 = vector.extract_strided_slice %310 {offsets = [0, 0], sizes = [2, 8], strides = [1, 1]} : vector<2x32xf32> to vector<2x8xf32>
    %312 = arith.negf %311 : vector<2x8xf32>
    %313 = math.exp %312 : vector<2x8xf32>
    %cst_84 = arith.constant 1.000000e+00 : f32
    %314 = vector.broadcast %cst_84 : f32 to vector<2x8xf32>
    %315 = arith.addf %314, %313 : vector<2x8xf32>
    %316 = arith.divf %314, %315 : vector<2x8xf32>
    %317 = vector.extract_strided_slice %310 {offsets = [0, 8], sizes = [2, 8], strides = [1, 1]} : vector<2x32xf32> to vector<2x8xf32>
    %318 = arith.negf %317 : vector<2x8xf32>
    %319 = math.exp %318 : vector<2x8xf32>
    %cst_85 = arith.constant 1.000000e+00 : f32
    %320 = vector.broadcast %cst_85 : f32 to vector<2x8xf32>
    %321 = arith.addf %320, %319 : vector<2x8xf32>
    %322 = arith.divf %320, %321 : vector<2x8xf32>
    %323 = vector.extract_strided_slice %310 {offsets = [0, 16], sizes = [2, 8], strides = [1, 1]} : vector<2x32xf32> to vector<2x8xf32>
    %324 = math.tanh %323 : vector<2x8xf32>
    %325 = vector.extract_strided_slice %310 {offsets = [0, 24], sizes = [2, 8], strides = [1, 1]} : vector<2x32xf32> to vector<2x8xf32>
    %326 = arith.negf %325 : vector<2x8xf32>
    %327 = math.exp %326 : vector<2x8xf32>
    %cst_86 = arith.constant 1.000000e+00 : f32
    %328 = vector.broadcast %cst_86 : f32 to vector<2x8xf32>
    %329 = arith.addf %328, %327 : vector<2x8xf32>
    %330 = arith.divf %328, %329 : vector<2x8xf32>
    %331 = arith.mulf %322, %279 : vector<2x8xf32>
    %332 = arith.mulf %316, %324 : vector<2x8xf32>
    %333 = arith.addf %331, %332 : vector<2x8xf32>
    %334 = math.tanh %333 : vector<2x8xf32>
    %335 = arith.mulf %330, %334 : vector<2x8xf32>
    %c5 = arith.constant 5 : index
    %c0_87 = arith.constant 0 : index
    %c0_88 = arith.constant 0 : index
    %336 = vector.load %arg12[%c5, %c0_87, %c0_88] : memref<8x2x8xf32, #tpu.memory_space<vmem>>, vector<1x2x8xf32>
    %337 = vector.shape_cast %336 : vector<1x2x8xf32> to vector<2x8xf32>
    %338 = vector.shape_cast %335 : vector<2x8xf32> to vector<1x2x8xf32>
    tpu.vector_store %arg12[%c5, %c0_87, %c0_88], %338 {strides = array<i32>} : memref<8x2x8xf32, #tpu.memory_space<vmem>>, vector<1x2x8xf32>,
    %339 = vector.extract_strided_slice %8 {offsets = [0, 6, 0], sizes = [2, 1, 32], strides = [1, 1, 1]} : vector<2x8x32xf32> to vector<2x1x32xf32>
    %340 = vector.shape_cast %339 : vector<2x1x32xf32> to vector<2x32xf32>
    %cst_89 = arith.constant dense<0.000000e+00> : vector<2x32xf32>
    %341 = tpu.matmul %335, %9, %cst_89 {dimension_numbers = #tpu.dot_dimension_numbers<[1], [0], [0], [1], [0, 0, 1, 1], [], []>} : vector<2x8xf32>, vector<8x32xf32>, vector<2x32xf32> -> vector<2x32xf32>
    %342 = arith.negf %341 : vector<2x32xf32>
    %343 = math.exp %342 : vector<2x32xf32>
    %cst_90 = arith.constant 1.000000e+00 : f32
    %344 = vector.broadcast %cst_90 : f32 to vector<2x32xf32>
    %345 = arith.addf %344, %343 : vector<2x32xf32>
    %346 = arith.divf %344, %345 : vector<2x32xf32>
    %cst_91 = arith.constant 2.000000e+00 : f32
    %347 = vector.broadcast %cst_91 : f32 to vector<2x32xf32>
    %348 = arith.mulf %347, %346 : vector<2x32xf32>
    %349 = arith.mulf %348, %340 : vector<2x32xf32>
    %cst_92 = arith.constant dense<0.000000e+00> : vector<2x40xf32>
    %350 = tpu.matmul %349, %10, %cst_92 {dimension_numbers = #tpu.dot_dimension_numbers<[1], [0], [0], [1], [0, 0, 1, 1], [], []>} : vector<2x32xf32>, vector<32x40xf32>, vector<2x40xf32> -> vector<2x40xf32>
    %351 = vector.extract_strided_slice %350 {offsets = [0, 0], sizes = [2, 8], strides = [1, 1]} : vector<2x40xf32> to vector<2x8xf32>
    %352 = arith.negf %351 : vector<2x8xf32>
    %353 = math.exp %352 : vector<2x8xf32>
    %cst_93 = arith.constant 1.000000e+00 : f32
    %354 = vector.broadcast %cst_93 : f32 to vector<2x8xf32>
    %355 = arith.addf %354, %353 : vector<2x8xf32>
    %356 = arith.divf %354, %355 : vector<2x8xf32>
    %cst_94 = arith.constant 2.000000e+00 : f32
    %357 = vector.broadcast %cst_94 : f32 to vector<2x8xf32>
    %358 = arith.mulf %357, %356 : vector<2x8xf32>
    %359 = arith.mulf %358, %335 : vector<2x8xf32>
    %360 = vector.extract_strided_slice %350 {offsets = [0, 8], sizes = [2, 32], strides = [1, 1]} : vector<2x40xf32> to vector<2x32xf32>
    %cst_95 = arith.constant dense<0.000000e+00> : vector<2x32xf32>
    %361 = tpu.matmul %359, %11, %cst_95 {dimension_numbers = #tpu.dot_dimension_numbers<[1], [0], [0], [1], [0, 0, 1, 1], [], []>} : vector<2x8xf32>, vector<8x32xf32>, vector<2x32xf32> -> vector<2x32xf32>
    %362 = arith.addf %360, %361 : vector<2x32xf32>
    %363 = vector.broadcast %12 : vector<1x32xf32> to vector<2x32xf32>
    %364 = arith.addf %362, %363 : vector<2x32xf32>
    %365 = vector.extract_strided_slice %364 {offsets = [0, 0], sizes = [2, 8], strides = [1, 1]} : vector<2x32xf32> to vector<2x8xf32>
    %366 = arith.negf %365 : vector<2x8xf32>
    %367 = math.exp %366 : vector<2x8xf32>
    %cst_96 = arith.constant 1.000000e+00 : f32
    %368 = vector.broadcast %cst_96 : f32 to vector<2x8xf32>
    %369 = arith.addf %368, %367 : vector<2x8xf32>
    %370 = arith.divf %368, %369 : vector<2x8xf32>
    %371 = vector.extract_strided_slice %364 {offsets = [0, 8], sizes = [2, 8], strides = [1, 1]} : vector<2x32xf32> to vector<2x8xf32>
    %372 = arith.negf %371 : vector<2x8xf32>
    %373 = math.exp %372 : vector<2x8xf32>
    %cst_97 = arith.constant 1.000000e+00 : f32
    %374 = vector.broadcast %cst_97 : f32 to vector<2x8xf32>
    %375 = arith.addf %374, %373 : vector<2x8xf32>
    %376 = arith.divf %374, %375 : vector<2x8xf32>
    %377 = vector.extract_strided_slice %364 {offsets = [0, 16], sizes = [2, 8], strides = [1, 1]} : vector<2x32xf32> to vector<2x8xf32>
    %378 = math.tanh %377 : vector<2x8xf32>
    %379 = vector.extract_strided_slice %364 {offsets = [0, 24], sizes = [2, 8], strides = [1, 1]} : vector<2x32xf32> to vector<2x8xf32>
    %380 = arith.negf %379 : vector<2x8xf32>
    %381 = math.exp %380 : vector<2x8xf32>
    %cst_98 = arith.constant 1.000000e+00 : f32
    %382 = vector.broadcast %cst_98 : f32 to vector<2x8xf32>
    %383 = arith.addf %382, %381 : vector<2x8xf32>
    %384 = arith.divf %382, %383 : vector<2x8xf32>
    %385 = arith.mulf %376, %333 : vector<2x8xf32>
    %386 = arith.mulf %370, %378 : vector<2x8xf32>
    %387 = arith.addf %385, %386 : vector<2x8xf32>
    %388 = math.tanh %387 : vector<2x8xf32>
    %389 = arith.mulf %384, %388 : vector<2x8xf32>
    %c6 = arith.constant 6 : index
    %c0_99 = arith.constant 0 : index
    %c0_100 = arith.constant 0 : index
    %390 = vector.load %arg12[%c6, %c0_99, %c0_100] : memref<8x2x8xf32, #tpu.memory_space<vmem>>, vector<1x2x8xf32>
    %391 = vector.shape_cast %390 : vector<1x2x8xf32> to vector<2x8xf32>
    %392 = vector.shape_cast %389 : vector<2x8xf32> to vector<1x2x8xf32>
    tpu.vector_store %arg12[%c6, %c0_99, %c0_100], %392 {strides = array<i32>} : memref<8x2x8xf32, #tpu.memory_space<vmem>>, vector<1x2x8xf32>,
    %393 = vector.extract_strided_slice %8 {offsets = [0, 7, 0], sizes = [2, 1, 32], strides = [1, 1, 1]} : vector<2x8x32xf32> to vector<2x1x32xf32>
    %394 = vector.shape_cast %393 : vector<2x1x32xf32> to vector<2x32xf32>
    %cst_101 = arith.constant dense<0.000000e+00> : vector<2x32xf32>
    %395 = tpu.matmul %389, %9, %cst_101 {dimension_numbers = #tpu.dot_dimension_numbers<[1], [0], [0], [1], [0, 0, 1, 1], [], []>} : vector<2x8xf32>, vector<8x32xf32>, vector<2x32xf32> -> vector<2x32xf32>
    %396 = arith.negf %395 : vector<2x32xf32>
    %397 = math.exp %396 : vector<2x32xf32>
    %cst_102 = arith.constant 1.000000e+00 : f32
    %398 = vector.broadcast %cst_102 : f32 to vector<2x32xf32>
    %399 = arith.addf %398, %397 : vector<2x32xf32>
    %400 = arith.divf %398, %399 : vector<2x32xf32>
    %cst_103 = arith.constant 2.000000e+00 : f32
    %401 = vector.broadcast %cst_103 : f32 to vector<2x32xf32>
    %402 = arith.mulf %401, %400 : vector<2x32xf32>
    %403 = arith.mulf %402, %394 : vector<2x32xf32>
    %cst_104 = arith.constant dense<0.000000e+00> : vector<2x40xf32>
    %404 = tpu.matmul %403, %10, %cst_104 {dimension_numbers = #tpu.dot_dimension_numbers<[1], [0], [0], [1], [0, 0, 1, 1], [], []>} : vector<2x32xf32>, vector<32x40xf32>, vector<2x40xf32> -> vector<2x40xf32>
    %405 = vector.extract_strided_slice %404 {offsets = [0, 0], sizes = [2, 8], strides = [1, 1]} : vector<2x40xf32> to vector<2x8xf32>
    %406 = arith.negf %405 : vector<2x8xf32>
    %407 = math.exp %406 : vector<2x8xf32>
    %cst_105 = arith.constant 1.000000e+00 : f32
    %408 = vector.broadcast %cst_105 : f32 to vector<2x8xf32>
    %409 = arith.addf %408, %407 : vector<2x8xf32>
    %410 = arith.divf %408, %409 : vector<2x8xf32>
    %cst_106 = arith.constant 2.000000e+00 : f32
    %411 = vector.broadcast %cst_106 : f32 to vector<2x8xf32>
    %412 = arith.mulf %411, %410 : vector<2x8xf32>
    %413 = arith.mulf %412, %389 : vector<2x8xf32>
    %414 = vector.extract_strided_slice %404 {offsets = [0, 8], sizes = [2, 32], strides = [1, 1]} : vector<2x40xf32> to vector<2x32xf32>
    %cst_107 = arith.constant dense<0.000000e+00> : vector<2x32xf32>
    %415 = tpu.matmul %413, %11, %cst_107 {dimension_numbers = #tpu.dot_dimension_numbers<[1], [0], [0], [1], [0, 0, 1, 1], [], []>} : vector<2x8xf32>, vector<8x32xf32>, vector<2x32xf32> -> vector<2x32xf32>
    %416 = arith.addf %414, %415 : vector<2x32xf32>
    %417 = vector.broadcast %12 : vector<1x32xf32> to vector<2x32xf32>
    %418 = arith.addf %416, %417 : vector<2x32xf32>
    %419 = vector.extract_strided_slice %418 {offsets = [0, 0], sizes = [2, 8], strides = [1, 1]} : vector<2x32xf32> to vector<2x8xf32>
    %420 = arith.negf %419 : vector<2x8xf32>
    %421 = math.exp %420 : vector<2x8xf32>
    %cst_108 = arith.constant 1.000000e+00 : f32
    %422 = vector.broadcast %cst_108 : f32 to vector<2x8xf32>
    %423 = arith.addf %422, %421 : vector<2x8xf32>
    %424 = arith.divf %422, %423 : vector<2x8xf32>
    %425 = vector.extract_strided_slice %418 {offsets = [0, 8], sizes = [2, 8], strides = [1, 1]} : vector<2x32xf32> to vector<2x8xf32>
    %426 = arith.negf %425 : vector<2x8xf32>
    %427 = math.exp %426 : vector<2x8xf32>
    %cst_109 = arith.constant 1.000000e+00 : f32
    %428 = vector.broadcast %cst_109 : f32 to vector<2x8xf32>
    %429 = arith.addf %428, %427 : vector<2x8xf32>
    %430 = arith.divf %428, %429 : vector<2x8xf32>
    %431 = vector.extract_strided_slice %418 {offsets = [0, 16], sizes = [2, 8], strides = [1, 1]} : vector<2x32xf32> to vector<2x8xf32>
    %432 = math.tanh %431 : vector<2x8xf32>
    %433 = vector.extract_strided_slice %418 {offsets = [0, 24], sizes = [2, 8], strides = [1, 1]} : vector<2x32xf32> to vector<2x8xf32>
    %434 = arith.negf %433 : vector<2x8xf32>
    %435 = math.exp %434 : vector<2x8xf32>
    %cst_110 = arith.constant 1.000000e+00 : f32
    %436 = vector.broadcast %cst_110 : f32 to vector<2x8xf32>
    %437 = arith.addf %436, %435 : vector<2x8xf32>
    %438 = arith.divf %436, %437 : vector<2x8xf32>
    %439 = arith.mulf %430, %387 : vector<2x8xf32>
    %440 = arith.mulf %424, %432 : vector<2x8xf32>
    %441 = arith.addf %439, %440 : vector<2x8xf32>
    %442 = math.tanh %441 : vector<2x8xf32>
    %443 = arith.mulf %438, %442 : vector<2x8xf32>
    %c7 = arith.constant 7 : index
    %c0_111 = arith.constant 0 : index
    %c0_112 = arith.constant 0 : index
    %444 = vector.load %arg12[%c7, %c0_111, %c0_112] : memref<8x2x8xf32, #tpu.memory_space<vmem>>, vector<1x2x8xf32>
    %445 = vector.shape_cast %444 : vector<1x2x8xf32> to vector<2x8xf32>
    %446 = vector.shape_cast %443 : vector<2x8xf32> to vector<1x2x8xf32>
    tpu.vector_store %arg12[%c7, %c0_111, %c0_112], %446 {strides = array<i32>} : memref<8x2x8xf32, #tpu.memory_space<vmem>>, vector<1x2x8xf32>,
    %c0_113 = arith.constant 0 : index
    %c0_114 = arith.constant 0 : index
    %c0_115 = arith.constant 0 : index
    %447 = vector.load %arg12[%c0_113, %c0_114, %c0_115] : memref<8x2x8xf32, #tpu.memory_space<vmem>>, vector<8x2x8xf32>
    %448 = vector.shape_cast %447 : vector<8x2x8xf32> to vector<16x8xf32>
    %c0_116 = arith.constant 0 : index
    %c0_117 = arith.constant 0 : index
    %449 = vector.load %arg7[%c0_116, %c0_117] : memref<8x36xf32, #tpu.memory_space<vmem>>, vector<8x36xf32>
    %cst_118 = arith.constant dense<0.000000e+00> : vector<16x36xf32>
    %450 = tpu.matmul %448, %449, %cst_118 {dimension_numbers = #tpu.dot_dimension_numbers<[1], [0], [0], [1], [0, 0, 1, 1], [], []>} : vector<16x8xf32>, vector<8x36xf32>, vector<16x36xf32> -> vector<16x36xf32>
    %451 = vector.shape_cast %450 : vector<16x36xf32> to vector<8x2x36xf32>
    %c0_119 = arith.constant 0 : index
    %c0_120 = arith.constant 0 : index
    %452 = vector.load %arg9[%c0_119, %c0_120] : memref<9x2xf32, #tpu.memory_space<vmem>>, vector<9x2xf32>
    %c0_121 = arith.constant 0 : index
    %c0_122 = arith.constant 0 : index
    %453 = vector.load %arg8[%c0_121, %c0_122] : memref<1x9xf32, #tpu.memory_space<vmem>>, vector<1x9xf32>
    %cst_123 = arith.constant 0.000000e+00 : f32
    %454 = vector.broadcast %cst_123 : f32 to vector<2x2xf32>
    %455 = vector.extract_strided_slice %451 {offsets = [0, 0, 0], sizes = [6, 2, 3], strides = [1, 1, 1]} : vector<8x2x36xf32> to vector<6x2x3xf32>
    %456 = vector.extract_strided_slice %451 {offsets = [1, 0, 3], sizes = [6, 2, 3], strides = [1, 1, 1]} : vector<8x2x36xf32> to vector<6x2x3xf32>
    %457 = arith.addf %455, %456 : vector<6x2x3xf32>
    %458 = vector.extract_strided_slice %451 {offsets = [2, 0, 6], sizes = [6, 2, 3], strides = [1, 1, 1]} : vector<8x2x36xf32> to vector<6x2x3xf32>
    %459 = arith.addf %457, %458 : vector<6x2x3xf32>
    %460 = vector.extract_strided_slice %453 {offsets = [0, 0], sizes = [1, 3], strides = [1, 1]} : vector<1x9xf32> to vector<1x3xf32>
    %461 = vector.shape_cast %460 : vector<1x3xf32> to vector<1x1x3xf32>
    %462 = vector.broadcast %461 : vector<1x1x3xf32> to vector<6x2x3xf32>
    %463 = arith.addf %459, %462 : vector<6x2x3xf32>
    %cst_124 = arith.constant 0.000000e+00 : f32
    %464 = vector.broadcast %cst_124 : f32 to vector<6x2x3xf32>
    %465 = arith.maximumf %463, %464 : vector<6x2x3xf32>
    %cst_125 = arith.constant dense<0xFF800000> : vector<2x3xf32>
    %466 = vector.multi_reduction <maximumf>, %465, %cst_125 [0] : vector<6x2x3xf32> to vector<2x3xf32>
    %467 = vector.extract_strided_slice %452 {offsets = [0, 0], sizes = [3, 2], strides = [1, 1]} : vector<9x2xf32> to vector<3x2xf32>
    %cst_126 = arith.constant dense<0.000000e+00> : vector<2x2xf32>
    %468 = tpu.matmul %466, %467, %cst_126 {dimension_numbers = #tpu.dot_dimension_numbers<[1], [0], [0], [1], [0, 0, 1, 1], [], []>} : vector<2x3xf32>, vector<3x2xf32>, vector<2x2xf32> -> vector<2x2xf32>
    %469 = arith.addf %454, %468 : vector<2x2xf32>
    %470 = vector.extract_strided_slice %451 {offsets = [0, 0, 9], sizes = [5, 2, 3], strides = [1, 1, 1]} : vector<8x2x36xf32> to vector<5x2x3xf32>
    %471 = vector.extract_strided_slice %451 {offsets = [1, 0, 12], sizes = [5, 2, 3], strides = [1, 1, 1]} : vector<8x2x36xf32> to vector<5x2x3xf32>
    %472 = arith.addf %470, %471 : vector<5x2x3xf32>
    %473 = vector.extract_strided_slice %451 {offsets = [2, 0, 15], sizes = [5, 2, 3], strides = [1, 1, 1]} : vector<8x2x36xf32> to vector<5x2x3xf32>
    %474 = arith.addf %472, %473 : vector<5x2x3xf32>
    %475 = vector.extract_strided_slice %451 {offsets = [3, 0, 18], sizes = [5, 2, 3], strides = [1, 1, 1]} : vector<8x2x36xf32> to vector<5x2x3xf32>
    %476 = arith.addf %474, %475 : vector<5x2x3xf32>
    %477 = vector.extract_strided_slice %453 {offsets = [0, 3], sizes = [1, 3], strides = [1, 1]} : vector<1x9xf32> to vector<1x3xf32>
    %478 = vector.shape_cast %477 : vector<1x3xf32> to vector<1x1x3xf32>
    %479 = vector.broadcast %478 : vector<1x1x3xf32> to vector<5x2x3xf32>
    %480 = arith.addf %476, %479 : vector<5x2x3xf32>
    %cst_127 = arith.constant 0.000000e+00 : f32
    %481 = vector.broadcast %cst_127 : f32 to vector<5x2x3xf32>
    %482 = arith.maximumf %480, %481 : vector<5x2x3xf32>
    %cst_128 = arith.constant dense<0xFF800000> : vector<2x3xf32>
    %483 = vector.multi_reduction <maximumf>, %482, %cst_128 [0] : vector<5x2x3xf32> to vector<2x3xf32>
    %484 = vector.extract_strided_slice %452 {offsets = [3, 0], sizes = [3, 2], strides = [1, 1]} : vector<9x2xf32> to vector<3x2xf32>
    %cst_129 = arith.constant dense<0.000000e+00> : vector<2x2xf32>
    %485 = tpu.matmul %483, %484, %cst_129 {dimension_numbers = #tpu.dot_dimension_numbers<[1], [0], [0], [1], [0, 0, 1, 1], [], []>} : vector<2x3xf32>, vector<3x2xf32>, vector<2x2xf32> -> vector<2x2xf32>
    %486 = arith.addf %469, %485 : vector<2x2xf32>
    %487 = vector.extract_strided_slice %451 {offsets = [0, 0, 21], sizes = [4, 2, 3], strides = [1, 1, 1]} : vector<8x2x36xf32> to vector<4x2x3xf32>
    %488 = vector.extract_strided_slice %451 {offsets = [1, 0, 24], sizes = [4, 2, 3], strides = [1, 1, 1]} : vector<8x2x36xf32> to vector<4x2x3xf32>
    %489 = arith.addf %487, %488 : vector<4x2x3xf32>
    %490 = vector.extract_strided_slice %451 {offsets = [2, 0, 27], sizes = [4, 2, 3], strides = [1, 1, 1]} : vector<8x2x36xf32> to vector<4x2x3xf32>
    %491 = arith.addf %489, %490 : vector<4x2x3xf32>
    %492 = vector.extract_strided_slice %451 {offsets = [3, 0, 30], sizes = [4, 2, 3], strides = [1, 1, 1]} : vector<8x2x36xf32> to vector<4x2x3xf32>
    %493 = arith.addf %491, %492 : vector<4x2x3xf32>
    %494 = vector.extract_strided_slice %451 {offsets = [4, 0, 33], sizes = [4, 2, 3], strides = [1, 1, 1]} : vector<8x2x36xf32> to vector<4x2x3xf32>
    %495 = arith.addf %493, %494 : vector<4x2x3xf32>
    %496 = vector.extract_strided_slice %453 {offsets = [0, 6], sizes = [1, 3], strides = [1, 1]} : vector<1x9xf32> to vector<1x3xf32>
    %497 = vector.shape_cast %496 : vector<1x3xf32> to vector<1x1x3xf32>
    %498 = vector.broadcast %497 : vector<1x1x3xf32> to vector<4x2x3xf32>
    %499 = arith.addf %495, %498 : vector<4x2x3xf32>
    %cst_130 = arith.constant 0.000000e+00 : f32
    %500 = vector.broadcast %cst_130 : f32 to vector<4x2x3xf32>
    %501 = arith.maximumf %499, %500 : vector<4x2x3xf32>
    %cst_131 = arith.constant dense<0xFF800000> : vector<2x3xf32>
    %502 = vector.multi_reduction <maximumf>, %501, %cst_131 [0] : vector<4x2x3xf32> to vector<2x3xf32>
    %503 = vector.extract_strided_slice %452 {offsets = [6, 0], sizes = [3, 2], strides = [1, 1]} : vector<9x2xf32> to vector<3x2xf32>
    %cst_132 = arith.constant dense<0.000000e+00> : vector<2x2xf32>
    %504 = tpu.matmul %502, %503, %cst_132 {dimension_numbers = #tpu.dot_dimension_numbers<[1], [0], [0], [1], [0, 0, 1, 1], [], []>} : vector<2x3xf32>, vector<3x2xf32>, vector<2x2xf32> -> vector<2x2xf32>
    %505 = arith.addf %486, %504 : vector<2x2xf32>
    %c0_133 = arith.constant 0 : index
    %c0_134 = arith.constant 0 : index
    %506 = vector.load %arg10[%c0_133, %c0_134] : memref<1x2xf32, #tpu.memory_space<vmem>>, vector<1x2xf32>
    %507 = vector.broadcast %506 : vector<1x2xf32> to vector<2x2xf32>
    %508 = arith.addf %505, %507 : vector<2x2xf32>
    %c0_135 = arith.constant 0 : index
    %c0_136 = arith.constant 0 : index
    %509 = vector.load %arg11[%c0_135, %c0_136] : memref<2x2xf32, #tpu.memory_space<vmem>>, vector<2x2xf32>
    tpu.vector_store %arg11[%c0_135, %c0_136], %508 {strides = array<i32>} : memref<2x2xf32, #tpu.memory_space<vmem>>, vector<2x2xf32>,
    return
  }
}

</mosaic_0001>

<bundles_post_ra>
// kernel: tpu_custom_call.1
= control target key start
LH: loop header
LB: loop body
LE: loop exit
PB: predicated region body
PF: predicated region fallthrough
CT: control target
= control target key end

     0   :  { %16 = vsyncpa [#allocation4], 0  ;;  %s2583_s0 = inlined_call_operand.vmem [shape: f32[2,8,16], index: 0, kind: input, shape index: {}]   ;;  %s2584_s1 = inlined_call_operand.hbm [shape: f32[16,32], index: 1, kind: input, shape index: {}]   ;;  %s2585_s2 = inlined_call_operand.vmem [shape: f32[1,32], index: 2, kind: input, shape index: {}]   ;;  %s2586_s3 = inlined_call_operand.hbm [shape: f32[8,32], index: 3, kind: input, shape index: {}]   ;;  %s2587_s4 = inlined_call_operand.hbm [shape: f32[32,40], index: 4, kind: input, shape index: {}]   ;;  %s2588_s5 = inlined_call_operand.hbm [shape: f32[8,32], index: 5, kind: input, shape index: {}]   ;;  %s2589_s6 = inlined_call_operand.vmem [shape: f32[1,32], index: 6, kind: input, shape index: {}]   ;;  %s2590_s7 = inlined_call_operand.hbm [shape: f32[8,36], index: 7, kind: input, shape index: {}]   ;;  %s2591_s8 = inlined_call_operand.vmem [shape: f32[1,9], index: 8, kind: input, shape index: {}]   ;;  %s2592_s9 = inlined_call_operand.vmem [shape: f32[9,2], index: 9, kind: input, shape index: {}]   ;;  %s2593_s10 = inlined_call_operand.vmem [shape: f32[1,2], index: 10, kind: input, shape index: {}]   ;;  %s2594_s11 = inlined_call_operand.hbm [shape: f32[2,2], index: 11, kind: output, shape index: {}]  }
   0x1   :  { %17 = vsyncpa [#allocation7], 0 }
   0x2   :  { %18 = vsyncpa [#allocation10], 0  ;;  %s42_s19 = sshll.u32 %s2586_s3, 4  ;;  %s43_s19 = int_to_ptr.hbm [resolvable:$true] %s42_s19 }
   0x3   :  { %19 = vsyncpa [#allocation5], 0  ;;  %s2183_s20 = smov [#allocation6]   ;;  %s66_s24 = sshll.u32 %s2588_s5, 4  ;;  %s67_s24 = int_to_ptr.hbm [resolvable:$true] %s66_s24 }
   0x4   :  { %s44_s21 = sshll.u32 %s2183_s20, 4  ;;  %s2184_s25 = smov [#allocation9]   ;;  %s45_s21 = int_to_ptr.vmem [resolvable:$true] %s44_s21 }
   0x5   :  { %47 = dma.hbm_to_vmem [thread:$0]  %s43_s19, 128, %s45_s21, [#allocation7]  }
   0x6   :  { %s68_s26 = sshll.u32 %s2184_s25, 4  ;;  %s26_s29 = sshll.u32 %s2584_s1, 4  ;;  %s69_s26 = int_to_ptr.vmem [resolvable:$true] %s68_s26  ;;  %s27_s29 = int_to_ptr.hbm [resolvable:$true] %s26_s29 }
   0x7   :  { %71 = dma.hbm_to_vmem [thread:$0]  %s67_s24, 128, %s69_s26, [#allocation10]  }
   0x8   :  { %s2185_s3 = smov [#allocation3]   ;;  %s52_s14 = sshll.u32 %s2587_s4, 4  ;;  %s53_s14 = int_to_ptr.hbm [resolvable:$true] %s52_s14 }
   0x9   :  { %s28_s30 = sshll.u32 %s2185_s3, 4  ;;  %s2186_s15 = smov 128   ;;  %s29_s30 = int_to_ptr.vmem [resolvable:$true] %s28_s30 }
   0xa   :  { %s2187_s5 = smov 8   ;;  %s2188_s16 = smov [#allocation8]  }
   0xb   :  { %34 = dma.hbm_to_vmem [thread:$0]  %s27_s29, 256, %s29_s30, [#allocation4], %s2186_s15, %s2186_s15, %s2187_s5  }
   0xc   :  { %s54_s17 = sshll.u32 %s2188_s16, 4  ;;  %s79_s1 = sshll.u32 %s2590_s7, 4  ;;  %s55_s17 = int_to_ptr.vmem [resolvable:$true] %s54_s17  ;;  %s80_s1 = int_to_ptr.hbm [resolvable:$true] %s79_s1 }
   0xd   :  { %60 = dma.hbm_to_vmem [thread:$0]  %s53_s14, 512, %s55_s17, [#allocation7], %s2186_s15, %s2186_s15, %s2187_s5  }
   0xe   :  { %s2189_s20 = smov [#allocation11]  }
   0xf   :  { %s81_s21 = sshll.u32 %s2189_s20, 4  ;;  %s82_s21 = int_to_ptr.vmem [resolvable:$true] %s81_s21 }
  0x10   :  { %84 = dma.hbm_to_vmem [thread:$0]  %s80_s1, 128, %s82_s21, [#allocation10]  }
  0x11   :  { %2175 = dma.done.wait [#allocation4], 256  }
  0x12   :  { %2176 = vsyncadd [#allocation4], 4294967040 }
  0x13   :  { %2177 = dma.done.wait [#allocation7], 640  }
  0x14   :  { %2178 = vsyncadd [#allocation7], 4294966656 }
  0x15   :  { %2179 = dma.done.wait [#allocation10], 256  }
  0x16   :  { %2180 = vsyncadd [#allocation10], 4294967040  ;;  %v114_v0 = vld [vmem:[#allocation3 + $0x8] sm:$0xff]  ;;  %v2279_v1 = vld [vmem:[#allocation6] sm:$0xff]  ;;  %vm119_vm0 = vcmask 130048   ;;  %v2190_v4 = vmov 0.0  }
  0x17   :  { %v113_v2 = vld [vmem:[#allocation3] sm:$0xff]  ;;  %140 = vmatpush.msra.mxu0 %v114_v0  ;;  %177 = vmatpush.msra.mxu1 %v2279_v1  ;;  %v111_v3 = vld [vmem:[%s2583_s0] sm:$0xff]  ;;  %v112_v5 = vld [vmem:[%s2583_s0 + $0x8] sm:$0xff]  ;;  %vm205_vm1 = vcmask 1041409   ;;  %vm209_vm6 = vcmask 261120   ;;  %vm158_vm11 = vcmask 64512  }
  0x18   :  { %178 = vmatmul.f32.vlgmr.msra.gmra.mxu1 %v2190_v4  ;;  %v2290_v6 = vld [vmem:[#allocation8 + $0x18] sm:$0xff]  ;;  %v2292_v7 = vld [vmem:[#allocation8 + $0x10] sm:$0xff]  ;;  %v2295_v8 = vld [vmem:[#allocation8 + $0x8] sm:$0xff]  ;;  %s2191_s26 = smov 112   ;;  %s2193_s27 = smov 96  }
  0x19   :  { %141 = vmatpush.msra.mxu0 %v113_v2  ;;  %348 = vmatpush.msrb.mxu1 %v2279_v1  ;;  %v2298_v9 = vld [vmem:[#allocation8] sm:$0xff]  ;;  %v1895_v10 = vld [vmem:[%s2585_s2] ss:$0 sm:$0xff]  ;;  %s2194_s28 = smov 125   ;;  %s2195_s29 = smov 122  }
  0x1a   :  { %1819 = vmatmul.msk.f32.vlgmr.msra.gmra.mxu0 %vm119_vm0, %v111_v3  ;;  %225 = vmatpush.msra.mxu2 %v2290_v6  ;;  %v2328_v55 = vld [vmem:[#allocation9] sm:$0xff]  ;;  %s2196_s3 = smov 119   ;;  %s2197_s30 = smov 116  }
  0x1b   :  { %510 = vmatpush.msra.mxu1 %v2279_v1  ;;  %272 = vmatpush.msra.mxu3 %v2328_v55  ;;  %s2198_s14 = smov 6   ;;  %s2199_s15 = smov 15  }
  0x1c   :  { %226 = vmatpush.msra.mxu2 %v2292_v7  ;;  %602 = vmatpush.msrb.mxu0 %v2328_v55  ;;  %s2201_s1 = smov [#allocation12]   ;;  %s1807_s7 = sshll.u32 %s2594_s11, 4  ;;  %s1808_s7 = int_to_ptr.hbm [resolvable:$true] %s1807_s7 }
  0x1d   :  { %392 = vmatpush.msrb.mxu3 %v2290_v6  ;;  %s1805_s20 = sshll.u32 %s2201_s1, 4  ;;  %s1806_s20 = int_to_ptr.vmem [resolvable:$true] %s1805_s20 }
  0x1e   :  { %227 = vmatpush.msra.mxu2 %v2295_v8  ;;  %836 = vmatpush.msra.mxu0 %v2279_v1 }
  0x1f   :  { %393 = vmatpush.msrb.mxu3 %v2292_v7 }
  0x20   :  { %228 = vmatpush.msra.mxu2 %v2298_v9 }
  0x21   :  { %394 = vmatpush.msrb.mxu3 %v2295_v8 }
  0x22   :  { %1820 = vmatmul.msk.f32.gmra.mxu0 %vm119_vm0, %v112_v5  ;;  %439 = vmatpush.msrb.mxu2 %v2328_v55  ;;  %vm329_vm0 = vcmask 58368  }
  0x23   :  { %395 = vmatpush.msrb.mxu3 %v2298_v9 }
  0x95   :  { %v179_v11 = vpop.f32.mrf.mxu1 }
  0x96   :  { %v1821_v12 = vmul.f32 -1.442695, %v179_v11 }
  0x97   :  { %v143_v13 = vpop.f32.mrf.mxu0 }
  0x98   :  { %1899 = vpow2.f32 %v1821_v12  ;;  %v144_v14 = vadd.f32 %v1895_v10, %v143_v13 }
  0x9a   :  { %1901 = vtanh.f32 %v144_v14  ;;  %v1896_v14 = vld [vmem:[%s2589_s6] ss:$0 sm:$0xff]  ;;  %s2192_s6 = smov 16  }
  0x9e   :  { %v1900_v15 = vpop.eup %1899 }
  0x9f   :  { %v185_v16 = vadd.f32 1.0, %v1900_v15  ;;  %v146_v17 = vpop.f32.mrf.mxu0 }
  0xa0   :  { %v147_v18 = vadd.f32 %v1895_v10, %v146_v17  ;;  %v1902_v19 = vpop.eup %1901 }
  0xa1   :  { %1903 = vrcp.f32 %v185_v16  ;;  %v373_v20 = vrot.slane %v1902_v19, 1  ;;  %v195_v22 = vand.u32 2147483647, %v185_v16  ;;  %v197_v23 = vand.u32 2147483648, %v185_v16 }
  0xa2   :  { %1905 = vtanh.f32 %v147_v18  ;;  %v535_v24 = vrot.slane %v1902_v19, 2  ;;  %v698_v25 = vrot.slane %v1902_v19, 3  ;;  %v861_v28 = vrot.slane %v1902_v19, 4 }
  0xa3   :  { %v1024_v29 = vrot.slane %v1902_v19, 5  ;;  %v1187_v30 = vrot.slane %v1902_v19, 6  ;;  %v1350_v34 = vrot.slane %v1902_v19, 7  ;;  %vm191_vm3 = vweird.f32 %v185_v16 }
  0xa4   :  { %v198_v48 = vor.u32 1.1754944e-38, %v197_v23  ;;  %vm196_vm5 = vcmp.eq.f32.partialorder %v195_v22, 8.507059e+37 }
  0xa7   :  { %v1904_v21 = vpop.eup %1903 }
  0xa8   :  { %v1906_v26 = vpop.eup %1905  ;;  %v187_v27 = vmul.f32 %v1904_v21, %v185_v16  ;;  %vm192_vm2 = vweird.f32 %v1904_v21 }
  0xa9   :  { %v2306_v31 = vsel %vm205_vm1, %v1906_v26, %v373_v20  ;;  %v536_v32 = vrot.slane %v1906_v26, 1  ;;  %v699_v33 = vrot.slane %v1906_v26, 2  ;;  %v862_v36 = vrot.slane %v1906_v26, 3  ;;  %vm193_vm4 = vmor %vm191_vm3, %vm192_vm2 }
  0xaa   :  { %v188_v35 = vsub.f32 1.0, %v187_v27  ;;  %v1025_v37 = vrot.slane %v1906_v26, 4  ;;  %v1188_v38 = vrot.slane %v1906_v26, 5  ;;  %v1351_v41 = vrot.slane %v1906_v26, 6 }
  0xab   :  { %v2309_v39 = vsel %vm205_vm1, %v536_v32, %v535_v24  ;;  %v2312_v40 = vsel %vm205_vm1, %v699_v33, %v698_v25  ;;  %v2315_v43 = vsel %vm205_vm1, %v862_v36, %v861_v28  ;;  %v204_v49 = vrot.slane %v1906_v26, 7 }
  0xac   :  { %v189_v42 = vmul.f32 %v1904_v21, %v188_v35  ;;  %v2318_v44 = vsel %vm205_vm1, %v1025_v37, %v1024_v29  ;;  %v2321_v45 = vsel %vm205_vm1, %v1188_v38, %v1187_v30  ;;  %v2324_v46 = vsel %vm205_vm1, %v1351_v41, %v1350_v34 }
  0xad   :  { %v206_v53 = vsel %vm205_vm1, %v204_v49, %v1902_v19 }
  0xae   :  { %v190_v47 = vadd.f32 %v1904_v21, %v189_v42 }
  0xb0   :  { %v194_v50 = vsel %vm193_vm4, %v1904_v21, %v190_v47 }
  0xb1   :  { %v199_v51 = vsel %vm196_vm5, %v198_v48, %v194_v50 }
  0xb2   :  { %v201_v52 = vmul.f32 2.0, %v199_v51 }
  0xb4   :  { %v208_v54 = vmul.f32 %v206_v53, %v201_v52 }
  0xb6   :  { %1822 = vmatmul.msk.f32.vlgmr.msra.gmra.mxu2 %vm209_vm6, %v208_v54 }
  0xb7   :  { %673 = vmatpush.msra.mxu2 %v2279_v1 }
 0x139   :  { %v230_v56 = vpop.f32.mrf.mxu2 }
 0x13a   :  { %v1823_v57 = vmul.f32 -1.442695, %v230_v56 }
 0x13c   :  { %1907 = vpow2.f32 %v1823_v57 }
 0x142   :  { %v1908_v58 = vpop.eup %1907 }
 0x143   :  { %v236_v59 = vadd.f32 1.0, %v1908_v58 }
 0x145   :  { %1909 = vrcp.f32 %v236_v59  ;;  %v248_v63 = vand.u32 2147483648, %v236_v59  ;;  %v246_v2 = vand.u32 2147483647, %v236_v59  ;;  %vm242_vm8 = vweird.f32 %v236_v59 }
 0x147   :  { %v249_v4 = vor.u32 1.1754944e-38, %v248_v63  ;;  %vm247_vm10 = vcmp.eq.f32.partialorder %v246_v2, 8.507059e+37 }
 0x14b   :  { %v1910_v60 = vpop.eup %1909 }
 0x14c   :  { %v238_v61 = vmul.f32 %v1910_v60, %v236_v59  ;;  %vm243_vm7 = vweird.f32 %v1910_v60 }
 0x14d   :  { %vm244_vm9 = vmor %vm242_vm8, %vm243_vm7 }
 0x14e   :  { %v239_v62 = vsub.f32 1.0, %v238_v61 }
 0x150   :  { %v240_v0 = vmul.f32 %v1910_v60, %v239_v62 }
 0x152   :  { %v241_v3 = vadd.f32 %v1910_v60, %v240_v0 }
 0x154   :  { %v245_v5 = vsel %vm244_vm9, %v1910_v60, %v241_v3 }
 0x155   :  { %v250_v10 = vsel %vm247_vm10, %v249_v4, %v245_v5 }
 0x156   :  { %v252_v11 = vmul.f32 2.0, %v250_v10 }
 0x158   :  { %v253_v12 = vmul.f32 0.0, %v252_v11 }
 0x15a   :  { %1824 = vmatmul.msk.f32.vlgmr.msra.gmra.mxu3 %vm158_vm11, %v253_v12 }
 0x15b   :  { %555 = vmatpush.msra.mxu3 %v2290_v6 }
 0x15d   :  { %556 = vmatpush.msra.mxu3 %v2292_v7 }
 0x15f   :  { %557 = vmatpush.msra.mxu3 %v2295_v8 }
 0x161   :  { %558 = vmatpush.msra.mxu3 %v2298_v9 }
 0x1dd   :  { %v274_v13 = vpop.f32.mrf.mxu3 }
 0x1de   :  { %278 = vrot.lane.b32.xlu0 %v274_v13, %s2187_s5 }
 0x1e6   :  { %284 = vrot.lane.b32.xlu0 %v1896_v14, %s2187_s5 }
 0x250   :  { %v279_v15 = vpop.permute.xlu0 %278 }
 0x251   :  { %v281_v16 = vadd.f32 %v279_v15, %v230_v56 }
 0x258   :  { %v2349_v17 = vpop.permute.xlu0 %284 }
 0x259   :  { %v287_v18 = vadd.f32 %v2349_v17, %v281_v16 }
 0x25b   :  { %1911 = vtanh.f32 %v287_v18  ;;  %v1825_v20 = vmul.f32 -1.442695, %v287_v18 }
 0x25d   :  { %1913 = vpow2.f32 %v1825_v20 }
 0x261   :  { %v1912_v19 = vpop.eup %1911 }
 0x262   :  { %310 = vrot.lane.b32.xlu1 %v1912_v19, %s2191_s26 }
 0x263   :  { %v1914_v21 = vpop.eup %1913 }
 0x264   :  { %v291_v22 = vadd.f32 1.0, %v1914_v21 }
 0x266   :  { %1915 = vrcp.f32 %v291_v22  ;;  %v303_v28 = vand.u32 2147483648, %v291_v22  ;;  %vm297_vm13 = vweird.f32 %v291_v22  ;;  %v301_v29 = vand.u32 2147483647, %v291_v22 }
 0x268   :  { %v304_v32 = vor.u32 1.1754944e-38, %v303_v28  ;;  %vm302_vm15 = vcmp.eq.f32.partialorder %v301_v29, 8.507059e+37 }
 0x26c   :  { %v1916_v23 = vpop.eup %1915 }
 0x26d   :  { %v293_v24 = vmul.f32 %v1916_v23, %v291_v22  ;;  %vm298_vm12 = vweird.f32 %v1916_v23 }
 0x26e   :  { %vm299_vm14 = vmor %vm297_vm13, %vm298_vm12 }
 0x26f   :  { %v294_v25 = vsub.f32 1.0, %v293_v24 }
 0x271   :  { %v295_v26 = vmul.f32 %v1916_v23, %v294_v25 }
 0x273   :  { %v296_v27 = vadd.f32 %v1916_v23, %v295_v26 }
 0x275   :  { %v300_v30 = vsel %vm299_vm14, %v1916_v23, %v296_v27 }
 0x276   :  { %v305_v34 = vsel %vm302_vm15, %v304_v32, %v300_v30 }
 0x277   :  { %v308_v36 = vmul.f32 0.0, %v305_v34 }
 0x2d4   :  { %v311_v33 = vpop.permute.xlu1 %310 }
 0x2d5   :  { %v313_v35 = vmul.f32 %v311_v33, %v305_v34 }
 0x2d7   :  { %315 = vrot.lane.b32.xlu1 %v313_v35, %s2187_s5 }
 0x349   :  { %v316_v37 = vpop.permute.xlu1 %315 }
 0x34a   :  { %v2354_v38 = vadd.f32 %v316_v37, %v308_v36 }
 0x34c   :  { %1917 = vtanh.f32 %v2354_v38 }
 0x352   :  { %v1918_v41 = vpop.eup %1917 }
 0x353   :  { %321 = vrot.lane.b32.xlu2 %v1918_v41, %s2192_s6 }
 0x3ad   :  { %v322_v42 = vpop.permute.xlu2 %321 }
 0x3ae   :  { %v324_v47 = vmul.f32 %v322_v42, %v305_v34 }
 0x3b0   :  { %326 = vrot.lane.b32.xlu2 %v324_v47, %s2193_s27 }
 0x40a   :  { %v327_v48 = vpop.permute.xlu2 %326 }
 0x40b   :  { %330 = vst.msk [vmem:[#allocation2] sm:$0x3] %vm329_vm0, %v327_v48  ;;  %1826 = vmatmul.msk.f32.vlgmr.msrb.gmra.mxu1 %vm158_vm11, %v327_v48 }
 0x40c   :  { %718 = vmatpush.msrb.mxu1 %v2290_v6 }
 0x40e   :  { %719 = vmatpush.msrb.mxu1 %v2292_v7 }
 0x410   :  { %720 = vmatpush.msrb.mxu1 %v2295_v8 }
 0x412   :  { %v1471_v49 = vld [vmem:[#allocation2] sm:$0x3]  ;;  %721 = vmatpush.msrb.mxu1 %v2298_v9 }
 0x413   :  { %1488 = vst [vmem:[#allocation1] ss:$4 sm:$0xff] %v1471_v49 }
 0x488   :  { %v350_v50 = vpop.f32.mrf.mxu1 }
 0x489   :  { %v1827_v51 = vmul.f32 -1.442695, %v350_v50 }
 0x48b   :  { %1919 = vpow2.f32 %v1827_v51 }
 0x491   :  { %v1920_v52 = vpop.eup %1919 }
 0x492   :  { %v356_v53 = vadd.f32 1.0, %v1920_v52 }
 0x494   :  { %1921 = vrcp.f32 %v356_v53  ;;  %v368_v58 = vand.u32 2147483648, %v356_v53  ;;  %v366_v60 = vand.u32 2147483647, %v356_v53  ;;  %vm362_vm2 = vweird.f32 %v356_v53 }
 0x496   :  { %v369_v62 = vor.u32 1.1754944e-38, %v368_v58  ;;  %vm367_vm4 = vcmp.eq.f32.partialorder %v366_v60, 8.507059e+37 }
 0x49a   :  { %v1922_v54 = vpop.eup %1921 }
 0x49b   :  { %v358_v56 = vmul.f32 %v1922_v54, %v356_v53  ;;  %vm363_vm1 = vweird.f32 %v1922_v54 }
 0x49c   :  { %vm364_vm3 = vmor %vm362_vm2, %vm363_vm1 }
 0x49d   :  { %v359_v57 = vsub.f32 1.0, %v358_v56 }
 0x49f   :  { %v360_v59 = vmul.f32 %v1922_v54, %v359_v57 }
 0x4a1   :  { %v361_v61 = vadd.f32 %v1922_v54, %v360_v59 }
 0x4a3   :  { %v365_v63 = vsel %vm364_vm3, %v1922_v54, %v361_v61 }
 0x4a4   :  { %v370_v0 = vsel %vm367_vm4, %v369_v62, %v365_v63 }
 0x4a5   :  { %v372_v2 = vmul.f32 2.0, %v370_v0 }
 0x4a7   :  { %v376_v3 = vmul.f32 %v2306_v31, %v372_v2 }
 0x4a9   :  { %1828 = vmatmul.msk.f32.vlgmr.msrb.gmra.mxu3 %vm209_vm6, %v376_v3 }
 0x4aa   :  { %765 = vmatpush.msrb.mxu3 %v2328_v55 }
 0x52c   :  { %v397_v4 = vpop.f32.mrf.mxu3 }
 0x52d   :  { %v1829_v5 = vmul.f32 -1.442695, %v397_v4 }
 0x52f   :  { %1923 = vpow2.f32 %v1829_v5 }
 0x535   :  { %v1924_v10 = vpop.eup %1923 }
 0x536   :  { %v403_v11 = vadd.f32 1.0, %v1924_v10 }
 0x538   :  { %1925 = vrcp.f32 %v403_v11  ;;  %v415_v15 = vand.u32 2147483648, %v403_v11  ;;  %v413_v18 = vand.u32 2147483647, %v403_v11  ;;  %vm409_vm7 = vweird.f32 %v403_v11 }
 0x53a   :  { %v416_v31 = vor.u32 1.1754944e-38, %v415_v15  ;;  %vm414_vm9 = vcmp.eq.f32.partialorder %v413_v18, 8.507059e+37 }
 0x53e   :  { %v1926_v12 = vpop.eup %1925 }
 0x53f   :  { %v405_v13 = vmul.f32 %v1926_v12, %v403_v11  ;;  %vm410_vm5 = vweird.f32 %v1926_v12 }
 0x540   :  { %vm411_vm8 = vmor %vm409_vm7, %vm410_vm5 }
 0x541   :  { %v406_v14 = vsub.f32 1.0, %v405_v13 }
 0x543   :  { %v407_v16 = vmul.f32 %v1926_v12, %v406_v14 }
 0x545   :  { %v408_v19 = vadd.f32 %v1926_v12, %v407_v16 }
 0x547   :  { %v412_v20 = vsel %vm411_vm8, %v1926_v12, %v408_v19 }
 0x548   :  { %v417_v21 = vsel %vm414_vm9, %v416_v31, %v412_v20 }
 0x549   :  { %v419_v22 = vmul.f32 2.0, %v417_v21 }
 0x54b   :  { %v420_v23 = vmul.f32 %v419_v22, %v327_v48 }
 0x54d   :  { %1830 = vmatmul.msk.f32.vlgmr.msrb.gmra.mxu2 %vm158_vm11, %v420_v23 }
 0x54e   :  { %881 = vmatpush.msrb.mxu2 %v2290_v6 }
 0x550   :  { %882 = vmatpush.msrb.mxu2 %v2292_v7 }
 0x552   :  { %883 = vmatpush.msrb.mxu2 %v2295_v8 }
 0x554   :  { %884 = vmatpush.msrb.mxu2 %v2298_v9 }
 0x5d0   :  { %v441_v24 = vpop.f32.mrf.mxu2 }
 0x5d1   :  { %445 = vrot.lane.b32.xlu0 %v441_v24, %s2187_s5 }
 0x643   :  { %v446_v25 = vpop.permute.xlu0 %445 }
 0x644   :  { %v448_v26 = vadd.f32 %v446_v25, %v397_v4 }
 0x646   :  { %v449_v27 = vadd.f32 %v448_v26, %v2349_v17 }
 0x648   :  { %1927 = vtanh.f32 %v449_v27  ;;  %v1831_v29 = vmul.f32 -1.442695, %v449_v27 }
 0x64a   :  { %1929 = vpow2.f32 %v1831_v29 }
 0x64e   :  { %v1928_v28 = vpop.eup %1927 }
 0x64f   :  { %472 = vrot.lane.b32.xlu1 %v1928_v28, %s2191_s26 }
 0x650   :  { %v1930_v30 = vpop.eup %1929 }
 0x651   :  { %v453_v32 = vadd.f32 1.0, %v1930_v30 }
 0x653   :  { %1931 = vrcp.f32 %v453_v32  ;;  %v465_v41 = vand.u32 2147483648, %v453_v32  ;;  %vm459_vm12 = vweird.f32 %v453_v32  ;;  %v463_v42 = vand.u32 2147483647, %v453_v32 }
 0x655   :  { %v466_v48 = vor.u32 1.1754944e-38, %v465_v41  ;;  %vm464_vm14 = vcmp.eq.f32.partialorder %v463_v42, 8.507059e+37 }
 0x659   :  { %v1932_v33 = vpop.eup %1931 }
 0x65a   :  { %v455_v34 = vmul.f32 %v1932_v33, %v453_v32  ;;  %vm460_vm10 = vweird.f32 %v1932_v33 }
 0x65b   :  { %vm461_vm13 = vmor %vm459_vm12, %vm460_vm10 }
 0x65c   :  { %v456_v35 = vsub.f32 1.0, %v455_v34 }
 0x65e   :  { %v457_v36 = vmul.f32 %v1932_v33, %v456_v35 }
 0x660   :  { %v458_v37 = vadd.f32 %v1932_v33, %v457_v36 }
 0x662   :  { %v462_v47 = vsel %vm461_vm13, %v1932_v33, %v458_v37 }
 0x663   :  { %v467_v50 = vsel %vm464_vm14, %v466_v48, %v462_v47 }
 0x664   :  { %v470_v52 = vmul.f32 %v467_v50, %v2354_v38 }
 0x6c1   :  { %v473_v49 = vpop.permute.xlu1 %472 }
 0x6c2   :  { %v475_v51 = vmul.f32 %v473_v49, %v467_v50 }
 0x6c4   :  { %477 = vrot.lane.b32.xlu2 %v475_v51, %s2187_s5 }
 0x71e   :  { %v478_v53 = vpop.permute.xlu2 %477 }
 0x71f   :  { %v2378_v54 = vadd.f32 %v478_v53, %v470_v52 }
 0x721   :  { %1933 = vtanh.f32 %v2378_v54 }
 0x727   :  { %v1934_v56 = vpop.eup %1933 }
 0x728   :  { %483 = vrot.lane.b32.xlu0 %v1934_v56, %s2192_s6 }
 0x79a   :  { %v484_v57 = vpop.permute.xlu0 %483 }
 0x79b   :  { %v486_v58 = vmul.f32 %v484_v57, %v467_v50 }
 0x79d   :  { %488 = vrot.lane.b32.xlu1 %v486_v58, %s2193_s27 }
 0x80f   :  { %v489_v59 = vpop.permute.xlu1 %488 }
 0x810   :  { %492 = vst.msk [vmem:[#allocation2 + $0x2] sm:$0x3] %vm329_vm0, %v489_v59  ;;  %1832 = vmatmul.msk.f32.vlgmr.msra.gmra.mxu1 %vm158_vm11, %v489_v59 }
 0x811   :  { %928 = vmatpush.msra.mxu1 %v2328_v55 }
 0x817   :  { %v1472_v38 = vld [vmem:[#allocation2 + $0x2] sm:$0x3] }
 0x818   :  { %1490 = vst [vmem:[#allocation1 + $0x1] ss:$4 sm:$0xff] %v1472_v38 }
 0x88d   :  { %v512_v60 = vpop.f32.mrf.mxu1 }
 0x88e   :  { %v1833_v61 = vmul.f32 -1.442695, %v512_v60 }
 0x890   :  { %1935 = vpow2.f32 %v1833_v61 }
 0x896   :  { %v1936_v62 = vpop.eup %1935 }
 0x897   :  { %v518_v63 = vadd.f32 1.0, %v1936_v62 }
 0x899   :  { %1937 = vrcp.f32 %v518_v63  ;;  %v530_v4 = vand.u32 2147483648, %v518_v63  ;;  %v528_v10 = vand.u32 2147483647, %v518_v63  ;;  %vm524_vm1 = vweird.f32 %v518_v63 }
 0x89b   :  { %v531_v12 = vor.u32 1.1754944e-38, %v530_v4  ;;  %vm529_vm3 = vcmp.eq.f32.partialorder %v528_v10, 8.507059e+37 }
 0x89f   :  { %v1938_v0 = vpop.eup %1937 }
 0x8a0   :  { %v520_v2 = vmul.f32 %v1938_v0, %v518_v63  ;;  %vm525_vm15 = vweird.f32 %v1938_v0 }
 0x8a1   :  { %vm526_vm2 = vmor %vm524_vm1, %vm525_vm15 }
 0x8a2   :  { %v521_v3 = vsub.f32 1.0, %v520_v2 }
 0x8a4   :  { %v522_v5 = vmul.f32 %v1938_v0, %v521_v3 }
 0x8a6   :  { %v523_v11 = vadd.f32 %v1938_v0, %v522_v5 }
 0x8a8   :  { %v527_v13 = vsel %vm526_vm2, %v1938_v0, %v523_v11 }
 0x8a9   :  { %v532_v14 = vsel %vm529_vm3, %v531_v12, %v527_v13 }
 0x8aa   :  { %v534_v15 = vmul.f32 2.0, %v532_v14 }
 0x8ac   :  { %v539_v16 = vmul.f32 %v2309_v39, %v534_v15 }
 0x8ae   :  { %1834 = vmatmul.msk.f32.vlgmr.msra.gmra.mxu3 %vm209_vm6, %v539_v16 }
 0x8af   :  { %999 = vmatpush.msra.mxu3 %v2279_v1 }
 0x931   :  { %v560_v18 = vpop.f32.mrf.mxu3 }
 0x932   :  { %v1835_v19 = vmul.f32 -1.442695, %v560_v18 }
 0x934   :  { %1939 = vpow2.f32 %v1835_v19 }
 0x93a   :  { %v1940_v31 = vpop.eup %1939 }
 0x93b   :  { %v566_v20 = vadd.f32 1.0, %v1940_v31 }
 0x93d   :  { %1941 = vrcp.f32 %v566_v20  ;;  %v578_v24 = vand.u32 2147483648, %v566_v20  ;;  %v576_v26 = vand.u32 2147483647, %v566_v20  ;;  %vm572_vm5 = vweird.f32 %v566_v20 }
 0x93f   :  { %v579_v39 = vor.u32 1.1754944e-38, %v578_v24  ;;  %vm577_vm8 = vcmp.eq.f32.partialorder %v576_v26, 8.507059e+37 }
 0x943   :  { %v1942_v21 = vpop.eup %1941 }
 0x944   :  { %v568_v22 = vmul.f32 %v1942_v21, %v566_v20  ;;  %vm573_vm4 = vweird.f32 %v1942_v21 }
 0x945   :  { %vm574_vm7 = vmor %vm572_vm5, %vm573_vm4 }
 0x946   :  { %v569_v23 = vsub.f32 1.0, %v568_v22 }
 0x948   :  { %v570_v25 = vmul.f32 %v1942_v21, %v569_v23 }
 0x94a   :  { %v571_v27 = vadd.f32 %v1942_v21, %v570_v25 }
 0x94c   :  { %v575_v28 = vsel %vm574_vm7, %v1942_v21, %v571_v27 }
 0x94d   :  { %v580_v29 = vsel %vm577_vm8, %v579_v39, %v575_v28 }
 0x94e   :  { %v582_v30 = vmul.f32 2.0, %v580_v29 }
 0x950   :  { %v583_v32 = vmul.f32 %v582_v30, %v489_v59 }
 0x952   :  { %1836 = vmatmul.msk.f32.vlgmr.msrb.gmra.mxu0 %vm158_vm11, %v583_v32 }
 0x953   :  { %1044 = vmatpush.msrb.mxu0 %v2290_v6 }
 0x955   :  { %1045 = vmatpush.msrb.mxu0 %v2292_v7 }
 0x957   :  { %1046 = vmatpush.msrb.mxu0 %v2295_v8 }
 0x959   :  { %1047 = vmatpush.msrb.mxu0 %v2298_v9 }
 0x9cf   :  { %v604_v33 = vpop.f32.mrf.mxu0 }
 0x9d0   :  { %608 = vrot.lane.b32.xlu2 %v604_v33, %s2187_s5 }
 0xa2a   :  { %v609_v34 = vpop.permute.xlu2 %608 }
 0xa2b   :  { %v611_v35 = vadd.f32 %v609_v34, %v560_v18 }
 0xa2d   :  { %v612_v36 = vadd.f32 %v611_v35, %v2349_v17 }
 0xa2f   :  { %1943 = vtanh.f32 %v612_v36  ;;  %v1837_v41 = vmul.f32 -1.442695, %v612_v36 }
 0xa31   :  { %1945 = vpow2.f32 %v1837_v41 }
 0xa35   :  { %v1944_v37 = vpop.eup %1943 }
 0xa36   :  { %635 = vrot.lane.b32.xlu0 %v1944_v37, %s2191_s26 }
 0xa37   :  { %v1946_v42 = vpop.eup %1945 }
 0xa38   :  { %v616_v47 = vadd.f32 1.0, %v1946_v42 }
 0xa3a   :  { %1947 = vrcp.f32 %v616_v47  ;;  %v628_v53 = vand.u32 2147483648, %v616_v47  ;;  %vm622_vm10 = vweird.f32 %v616_v47  ;;  %v626_v56 = vand.u32 2147483647, %v616_v47 }
 0xa3c   :  { %v629_v58 = vor.u32 1.1754944e-38, %v628_v53  ;;  %vm627_vm13 = vcmp.eq.f32.partialorder %v626_v56, 8.507059e+37 }
 0xa40   :  { %v1948_v48 = vpop.eup %1947 }
 0xa41   :  { %v618_v49 = vmul.f32 %v1948_v48, %v616_v47  ;;  %vm623_vm9 = vweird.f32 %v1948_v48 }
 0xa42   :  { %vm624_vm12 = vmor %vm622_vm10, %vm623_vm9 }
 0xa43   :  { %v619_v50 = vsub.f32 1.0, %v618_v49 }
 0xa45   :  { %v620_v51 = vmul.f32 %v1948_v48, %v619_v50 }
 0xa47   :  { %v621_v52 = vadd.f32 %v1948_v48, %v620_v51 }
 0xa49   :  { %v625_v57 = vsel %vm624_vm12, %v1948_v48, %v621_v52 }
 0xa4a   :  { %v630_v38 = vsel %vm627_vm13, %v629_v58, %v625_v57 }
 0xa4b   :  { %v633_v61 = vmul.f32 %v630_v38, %v2378_v54 }
 0xaa8   :  { %v636_v59 = vpop.permute.xlu0 %635 }
 0xaa9   :  { %v638_v60 = vmul.f32 %v636_v59, %v630_v38 }
 0xaab   :  { %640 = vrot.lane.b32.xlu1 %v638_v60, %s2187_s5 }
 0xb1d   :  { %v641_v62 = vpop.permute.xlu1 %640 }
 0xb1e   :  { %v2399_v63 = vadd.f32 %v641_v62, %v633_v61 }
 0xb20   :  { %1949 = vtanh.f32 %v2399_v63 }
 0xb26   :  { %v1950_v0 = vpop.eup %1949 }
 0xb27   :  { %646 = vrot.lane.b32.xlu2 %v1950_v0, %s2192_s6 }
 0xb81   :  { %v647_v2 = vpop.permute.xlu2 %646 }
 0xb82   :  { %v649_v3 = vmul.f32 %v647_v2, %v630_v38 }
 0xb84   :  { %651 = vrot.lane.b32.xlu0 %v649_v3, %s2193_s27 }
 0xbf6   :  { %v652_v4 = vpop.permute.xlu0 %651 }
 0xbf7   :  { %655 = vst.msk [vmem:[#allocation2 + $0x4] sm:$0x3] %vm329_vm0, %v652_v4  ;;  %1838 = vmatmul.msk.f32.vlgmr.msra.gmra.mxu2 %vm158_vm11, %v652_v4 }
 0xbf8   :  { %1091 = vmatpush.msra.mxu2 %v2328_v55 }
 0xbfe   :  { %v1473_v54 = vld [vmem:[#allocation2 + $0x4] sm:$0x3] }
 0xbff   :  { %1492 = vst [vmem:[#allocation1 + $0x2] ss:$4 sm:$0xff] %v1473_v54 }
 0xc7a   :  { %v675_v5 = vpop.f32.mrf.mxu2 }
 0xc7b   :  { %v1839_v10 = vmul.f32 -1.442695, %v675_v5 }
 0xc7d   :  { %1951 = vpow2.f32 %v1839_v10 }
 0xc83   :  { %v1952_v11 = vpop.eup %1951 }
 0xc84   :  { %v681_v12 = vadd.f32 1.0, %v1952_v11 }
 0xc86   :  { %1953 = vrcp.f32 %v681_v12  ;;  %v693_v16 = vand.u32 2147483648, %v681_v12  ;;  %v691_v19 = vand.u32 2147483647, %v681_v12  ;;  %vm687_vm15 = vweird.f32 %v681_v12 }
 0xc88   :  { %v694_v20 = vor.u32 1.1754944e-38, %v693_v16  ;;  %vm692_vm2 = vcmp.eq.f32.partialorder %v691_v19, 8.507059e+37 }
 0xc8c   :  { %v1954_v13 = vpop.eup %1953 }
 0xc8d   :  { %v683_v14 = vmul.f32 %v1954_v13, %v681_v12  ;;  %vm688_vm14 = vweird.f32 %v1954_v13 }
 0xc8e   :  { %vm689_vm1 = vmor %vm687_vm15, %vm688_vm14 }
 0xc8f   :  { %v684_v15 = vsub.f32 1.0, %v683_v14 }
 0xc91   :  { %v685_v18 = vmul.f32 %v1954_v13, %v684_v15 }
 0xc93   :  { %v686_v31 = vadd.f32 %v1954_v13, %v685_v18 }
 0xc95   :  { %v690_v21 = vsel %vm689_vm1, %v1954_v13, %v686_v31 }
 0xc96   :  { %v695_v22 = vsel %vm692_vm2, %v694_v20, %v690_v21 }
 0xc97   :  { %v697_v23 = vmul.f32 2.0, %v695_v22 }
 0xc99   :  { %v702_v24 = vmul.f32 %v2312_v40, %v697_v23 }
 0xc9b   :  { %1840 = vmatmul.msk.f32.vlgmr.msrb.gmra.mxu1 %vm209_vm6, %v702_v24 }
 0xc9c   :  { %1162 = vmatpush.msrb.mxu1 %v2279_v1 }
 0xd18   :  { %v723_v25 = vpop.f32.mrf.mxu1 }
 0xd19   :  { %v1841_v26 = vmul.f32 -1.442695, %v723_v25 }
 0xd1b   :  { %1955 = vpow2.f32 %v1841_v26 }
 0xd21   :  { %v1956_v27 = vpop.eup %1955 }
 0xd22   :  { %v729_v39 = vadd.f32 1.0, %v1956_v27 }
 0xd24   :  { %1957 = vrcp.f32 %v729_v39  ;;  %v741_v32 = vand.u32 2147483648, %v729_v39  ;;  %v739_v34 = vand.u32 2147483647, %v729_v39  ;;  %vm735_vm4 = vweird.f32 %v729_v39 }
 0xd26   :  { %v742_v40 = vor.u32 1.1754944e-38, %v741_v32  ;;  %vm740_vm7 = vcmp.eq.f32.partialorder %v739_v34, 8.507059e+37 }
 0xd2a   :  { %v1958_v28 = vpop.eup %1957 }
 0xd2b   :  { %v731_v29 = vmul.f32 %v1958_v28, %v729_v39  ;;  %vm736_vm3 = vweird.f32 %v1958_v28 }
 0xd2c   :  { %vm737_vm5 = vmor %vm735_vm4, %vm736_vm3 }
 0xd2d   :  { %v732_v30 = vsub.f32 1.0, %v731_v29 }
 0xd2f   :  { %v733_v33 = vmul.f32 %v1958_v28, %v732_v30 }
 0xd31   :  { %v734_v35 = vadd.f32 %v1958_v28, %v733_v33 }
 0xd33   :  { %v738_v36 = vsel %vm737_vm5, %v1958_v28, %v734_v35 }
 0xd34   :  { %v743_v37 = vsel %vm740_vm7, %v742_v40, %v738_v36 }
 0xd35   :  { %v745_v41 = vmul.f32 2.0, %v743_v37 }
 0xd37   :  { %v746_v42 = vmul.f32 %v745_v41, %v652_v4 }
 0xd39   :  { %1842 = vmatmul.msk.f32.vlgmr.msrb.gmra.mxu3 %vm158_vm11, %v746_v42 }
 0xd3a   :  { %1207 = vmatpush.msrb.mxu3 %v2290_v6 }
 0xd3c   :  { %1208 = vmatpush.msrb.mxu3 %v2292_v7 }
 0xd3e   :  { %1209 = vmatpush.msrb.mxu3 %v2295_v8 }
 0xd40   :  { %1210 = vmatpush.msrb.mxu3 %v2298_v9 }
 0xdbc   :  { %v767_v47 = vpop.f32.mrf.mxu3 }
 0xdbd   :  { %771 = vrot.lane.b32.xlu1 %v767_v47, %s2187_s5 }
 0xe2f   :  { %v772_v48 = vpop.permute.xlu1 %771 }
 0xe30   :  { %v774_v49 = vadd.f32 %v772_v48, %v723_v25 }
 0xe32   :  { %v775_v50 = vadd.f32 %v774_v49, %v2349_v17 }
 0xe34   :  { %1959 = vtanh.f32 %v775_v50  ;;  %v1843_v52 = vmul.f32 -1.442695, %v775_v50 }
 0xe36   :  { %1961 = vpow2.f32 %v1843_v52 }
 0xe3a   :  { %v1960_v51 = vpop.eup %1959 }
 0xe3b   :  { %798 = vrot.lane.b32.xlu2 %v1960_v51, %s2191_s26 }
 0xe3c   :  { %v1962_v53 = vpop.eup %1961 }
 0xe3d   :  { %v779_v56 = vadd.f32 1.0, %v1962_v53 }
 0xe3f   :  { %1963 = vrcp.f32 %v779_v56  ;;  %v791_v61 = vand.u32 2147483648, %v779_v56  ;;  %vm785_vm9 = vweird.f32 %v779_v56  ;;  %v789_v62 = vand.u32 2147483647, %v779_v56 }
 0xe41   :  { %v792_v2 = vor.u32 1.1754944e-38, %v791_v61  ;;  %vm790_vm12 = vcmp.eq.f32.partialorder %v789_v62, 8.507059e+37 }
 0xe45   :  { %v1964_v57 = vpop.eup %1963 }
 0xe46   :  { %v781_v58 = vmul.f32 %v1964_v57, %v779_v56  ;;  %vm786_vm8 = vweird.f32 %v1964_v57 }
 0xe47   :  { %vm787_vm10 = vmor %vm785_vm9, %vm786_vm8 }
 0xe48   :  { %v782_v59 = vsub.f32 1.0, %v781_v58 }
 0xe4a   :  { %v783_v38 = vmul.f32 %v1964_v57, %v782_v59 }
 0xe4c   :  { %v784_v60 = vadd.f32 %v1964_v57, %v783_v38 }
 0xe4e   :  { %v788_v0 = vsel %vm787_vm10, %v1964_v57, %v784_v60 }
 0xe4f   :  { %v793_v4 = vsel %vm790_vm12, %v792_v2, %v788_v0 }
 0xe50   :  { %v796_v5 = vmul.f32 %v793_v4, %v2399_v63 }
 0xe95   :  { %v799_v3 = vpop.permute.xlu2 %798 }
 0xe96   :  { %v801_v54 = vmul.f32 %v799_v3, %v793_v4 }
 0xe98   :  { %803 = vrot.lane.b32.xlu0 %v801_v54, %s2187_s5 }
 0xf0a   :  { %v804_v10 = vpop.permute.xlu0 %803 }
 0xf0b   :  { %v2420_v11 = vadd.f32 %v804_v10, %v796_v5 }
 0xf0d   :  { %1965 = vtanh.f32 %v2420_v11 }
 0xf13   :  { %v1966_v12 = vpop.eup %1965 }
 0xf14   :  { %809 = vrot.lane.b32.xlu1 %v1966_v12, %s2192_s6 }
 0xf86   :  { %v810_v13 = vpop.permute.xlu1 %809 }
 0xf87   :  { %v812_v14 = vmul.f32 %v810_v13, %v793_v4 }
 0xf89   :  { %814 = vrot.lane.b32.xlu2 %v812_v14, %s2193_s27 }
 0xfe3   :  { %v815_v15 = vpop.permute.xlu2 %814 }
 0xfe4   :  { %818 = vst.msk [vmem:[#allocation2 + $0x6] sm:$0x3] %vm329_vm0, %v815_v15  ;;  %1844 = vmatmul.msk.f32.vlgmr.msra.gmra.mxu0 %vm158_vm11, %v815_v15 }
 0xfe5   :  { %1254 = vmatpush.msra.mxu0 %v2328_v55 }
 0xfeb   :  { %v1474_v63 = vld [vmem:[#allocation2 + $0x6] sm:$0x3] }
 0xfec   :  { %1494 = vst [vmem:[#allocation1 + $0x3] ss:$4 sm:$0xff] %v1474_v63 }
0x1061   :  { %v838_v16 = vpop.f32.mrf.mxu0 }
0x1062   :  { %v1845_v18 = vmul.f32 -1.442695, %v838_v16 }
0x1064   :  { %1967 = vpow2.f32 %v1845_v18 }
0x106a   :  { %v1968_v19 = vpop.eup %1967 }
0x106b   :  { %v844_v31 = vadd.f32 1.0, %v1968_v19 }
0x106d   :  { %1969 = vrcp.f32 %v844_v31  ;;  %v856_v23 = vand.u32 2147483648, %v844_v31  ;;  %v854_v25 = vand.u32 2147483647, %v844_v31  ;;  %vm850_vm14 = vweird.f32 %v844_v31 }
0x106f   :  { %v857_v27 = vor.u32 1.1754944e-38, %v856_v23  ;;  %vm855_vm1 = vcmp.eq.f32.partialorder %v854_v25, 8.507059e+37 }
0x1073   :  { %v1970_v20 = vpop.eup %1969 }
0x1074   :  { %v846_v21 = vmul.f32 %v1970_v20, %v844_v31  ;;  %vm851_vm13 = vweird.f32 %v1970_v20 }
0x1075   :  { %vm852_vm15 = vmor %vm850_vm14, %vm851_vm13 }
0x1076   :  { %v847_v22 = vsub.f32 1.0, %v846_v21 }
0x1078   :  { %v848_v24 = vmul.f32 %v1970_v20, %v847_v22 }
0x107a   :  { %v849_v26 = vadd.f32 %v1970_v20, %v848_v24 }
0x107c   :  { %v853_v39 = vsel %vm852_vm15, %v1970_v20, %v849_v26 }
0x107d   :  { %v858_v28 = vsel %vm855_vm1, %v857_v27, %v853_v39 }
0x107e   :  { %v860_v29 = vmul.f32 2.0, %v858_v28 }
0x1080   :  { %v865_v30 = vmul.f32 %v2315_v43, %v860_v29 }
0x1082   :  { %1846 = vmatmul.msk.f32.vlgmr.msrb.gmra.mxu2 %vm209_vm6, %v865_v30 }
0x1083   :  { %1325 = vmatpush.msrb.mxu2 %v2279_v1 }
0x1105   :  { %v886_v32 = vpop.f32.mrf.mxu2 }
0x1106   :  { %v1847_v33 = vmul.f32 -1.442695, %v886_v32 }
0x1108   :  { %1971 = vpow2.f32 %v1847_v33 }
0x110e   :  { %v1972_v34 = vpop.eup %1971 }
0x110f   :  { %v892_v35 = vadd.f32 1.0, %v1972_v34 }
0x1111   :  { %1973 = vrcp.f32 %v892_v35  ;;  %v904_v41 = vand.u32 2147483648, %v892_v35  ;;  %v902_v47 = vand.u32 2147483647, %v892_v35  ;;  %vm898_vm3 = vweird.f32 %v892_v35 }
0x1113   :  { %v905_v43 = vor.u32 1.1754944e-38, %v904_v41  ;;  %vm903_vm5 = vcmp.eq.f32.partialorder %v902_v47, 8.507059e+37 }
0x1117   :  { %v1974_v40 = vpop.eup %1973 }
0x1118   :  { %v894_v36 = vmul.f32 %v1974_v40, %v892_v35  ;;  %vm899_vm2 = vweird.f32 %v1974_v40 }
0x1119   :  { %vm900_vm4 = vmor %vm898_vm3, %vm899_vm2 }
0x111a   :  { %v895_v37 = vsub.f32 1.0, %v894_v36 }
0x111c   :  { %v896_v42 = vmul.f32 %v1974_v40, %v895_v37 }
0x111e   :  { %v897_v48 = vadd.f32 %v1974_v40, %v896_v42 }
0x1120   :  { %v901_v49 = vsel %vm900_vm4, %v1974_v40, %v897_v48 }
0x1121   :  { %v906_v1 = vsel %vm903_vm5, %v905_v43, %v901_v49 }
0x1122   :  { %v908_v50 = vmul.f32 2.0, %v906_v1 }
0x1124   :  { %v909_v51 = vmul.f32 %v908_v50, %v815_v15 }
0x1126   :  { %1848 = vmatmul.msk.f32.vlgmr.msra.gmra.mxu1 %vm158_vm11, %v909_v51 }
0x1127   :  { %1370 = vmatpush.msra.mxu1 %v2290_v6 }
0x1129   :  { %1371 = vmatpush.msra.mxu1 %v2292_v7 }
0x112b   :  { %1372 = vmatpush.msra.mxu1 %v2295_v8 }
0x112d   :  { %1373 = vmatpush.msra.mxu1 %v2298_v9 }
0x11a3   :  { %v930_v52 = vpop.f32.mrf.mxu1 }
0x11a4   :  { %934 = vrot.lane.b32.xlu0 %v930_v52, %s2187_s5 }
0x1216   :  { %v935_v53 = vpop.permute.xlu0 %934 }
0x1217   :  { %v937_v56 = vadd.f32 %v935_v53, %v886_v32 }
0x1219   :  { %v938_v57 = vadd.f32 %v937_v56, %v2349_v17 }
0x121b   :  { %1975 = vtanh.f32 %v938_v57  ;;  %v1849_v59 = vmul.f32 -1.442695, %v938_v57 }
0x121d   :  { %1977 = vpow2.f32 %v1849_v59 }
0x1221   :  { %v1976_v58 = vpop.eup %1975 }
0x1222   :  { %961 = vrot.lane.b32.xlu1 %v1976_v58, %s2191_s26 }
0x1223   :  { %v1978_v6 = vpop.eup %1977 }
0x1224   :  { %v942_v38 = vadd.f32 1.0, %v1978_v6 }
0x1226   :  { %1979 = vrcp.f32 %v942_v38  ;;  %v954_v62 = vand.u32 2147483648, %v942_v38  ;;  %vm948_vm8 = vweird.f32 %v942_v38  ;;  %v952_v0 = vand.u32 2147483647, %v942_v38 }
0x1228   :  { %v955_v3 = vor.u32 1.1754944e-38, %v954_v62  ;;  %vm953_vm10 = vcmp.eq.f32.partialorder %v952_v0, 8.507059e+37 }
0x122c   :  { %v1980_v7 = vpop.eup %1979 }
0x122d   :  { %v944_v8 = vmul.f32 %v1980_v7, %v942_v38  ;;  %vm949_vm7 = vweird.f32 %v1980_v7 }
0x122e   :  { %vm950_vm9 = vmor %vm948_vm8, %vm949_vm7 }
0x122f   :  { %v945_v60 = vsub.f32 1.0, %v944_v8 }
0x1231   :  { %v946_v9 = vmul.f32 %v1980_v7, %v945_v60 }
0x1233   :  { %v947_v61 = vadd.f32 %v1980_v7, %v946_v9 }
0x1235   :  { %v951_v2 = vsel %vm950_vm9, %v1980_v7, %v947_v61 }
0x1236   :  { %v956_v54 = vsel %vm953_vm10, %v955_v3, %v951_v2 }
0x1237   :  { %v959_v10 = vmul.f32 %v956_v54, %v2420_v11 }
0x1294   :  { %v962_v4 = vpop.permute.xlu1 %961 }
0x1295   :  { %v964_v5 = vmul.f32 %v962_v4, %v956_v54 }
0x1297   :  { %966 = vrot.lane.b32.xlu2 %v964_v5, %s2187_s5 }
0x12f1   :  { %v967_v12 = vpop.permute.xlu2 %966 }
0x12f2   :  { %v2441_v13 = vadd.f32 %v967_v12, %v959_v10 }
0x12f4   :  { %1981 = vtanh.f32 %v2441_v13 }
0x12fa   :  { %v1982_v14 = vpop.eup %1981 }
0x12fb   :  { %972 = vrot.lane.b32.xlu0 %v1982_v14, %s2192_s6 }
0x136d   :  { %v973_v15 = vpop.permute.xlu0 %972 }
0x136e   :  { %v975_v63 = vmul.f32 %v973_v15, %v956_v54 }
0x1370   :  { %977 = vrot.lane.b32.xlu1 %v975_v63, %s2193_s27 }
0x13e2   :  { %v978_v16 = vpop.permute.xlu1 %977 }
0x13e3   :  { %981 = vst.msk [vmem:[#allocation2 + $0x8] sm:$0x3] %vm329_vm0, %v978_v16  ;;  %1850 = vmatmul.msk.f32.vlgmr.msra.gmra.mxu3 %vm158_vm11, %v978_v16 }
0x13e4   :  { %1417 = vmatpush.msra.mxu3 %v2328_v55 }
0x13ea   :  { %v1475_v11 = vld [vmem:[#allocation2 + $0x8] sm:$0x3] }
0x13eb   :  { %1496 = vst [vmem:[#allocation1 + $0x20] ss:$4 sm:$0xff] %v1475_v11 }
0x1466   :  { %v1001_v18 = vpop.f32.mrf.mxu3 }
0x1467   :  { %v1851_v19 = vmul.f32 -1.442695, %v1001_v18 }
0x1469   :  { %1983 = vpow2.f32 %v1851_v19 }
0x146f   :  { %v1984_v31 = vpop.eup %1983 }
0x1470   :  { %v1007_v20 = vadd.f32 1.0, %v1984_v31 }
0x1472   :  { %1985 = vrcp.f32 %v1007_v20  ;;  %v1019_v24 = vand.u32 2147483648, %v1007_v20  ;;  %v1017_v26 = vand.u32 2147483647, %v1007_v20  ;;  %vm1013_vm13 = vweird.f32 %v1007_v20 }
0x1474   :  { %v1020_v39 = vor.u32 1.1754944e-38, %v1019_v24  ;;  %vm1018_vm15 = vcmp.eq.f32.partialorder %v1017_v26, 8.507059e+37 }
0x1478   :  { %v1986_v21 = vpop.eup %1985 }
0x1479   :  { %v1009_v22 = vmul.f32 %v1986_v21, %v1007_v20  ;;  %vm1014_vm12 = vweird.f32 %v1986_v21 }
0x147a   :  { %vm1015_vm14 = vmor %vm1013_vm13, %vm1014_vm12 }
0x147b   :  { %v1010_v23 = vsub.f32 1.0, %v1009_v22 }
0x147d   :  { %v1011_v25 = vmul.f32 %v1986_v21, %v1010_v23 }
0x147f   :  { %v1012_v27 = vadd.f32 %v1986_v21, %v1011_v25 }
0x1481   :  { %v1016_v55 = vsel %vm1015_vm14, %v1986_v21, %v1012_v27 }
0x1482   :  { %v1021_v28 = vsel %vm1018_vm15, %v1020_v39, %v1016_v55 }
0x1483   :  { %v1023_v29 = vmul.f32 2.0, %v1021_v28 }
0x1485   :  { %v1028_v30 = vmul.f32 %v2318_v44, %v1023_v29 }
0x1487   :  { %1852 = vmatmul.msk.f32.vlgmr.msrb.gmra.mxu0 %vm209_vm6, %v1028_v30 }
0x1504   :  { %v1049_v32 = vpop.f32.mrf.mxu0 }
0x1505   :  { %v1853_v33 = vmul.f32 -1.442695, %v1049_v32 }
0x1507   :  { %1987 = vpow2.f32 %v1853_v33  ;;  %v1479_v33 = vld [vmem:[#allocation11] sm:$0xff] }
0x1508   :  { %1524 = vmatpush.msrb.mxu0 %v1479_v33 }
0x150d   :  { %v1988_v34 = vpop.eup %1987 }
0x150e   :  { %v1055_v35 = vadd.f32 1.0, %v1988_v34 }
0x1510   :  { %1989 = vrcp.f32 %v1055_v35  ;;  %v1067_v41 = vand.u32 2147483648, %v1055_v35  ;;  %v1065_v47 = vand.u32 2147483647, %v1055_v35  ;;  %vm1061_vm2 = vweird.f32 %v1055_v35 }
0x1512   :  { %v1068_v43 = vor.u32 1.1754944e-38, %v1067_v41  ;;  %vm1066_vm4 = vcmp.eq.f32.partialorder %v1065_v47, 8.507059e+37 }
0x1516   :  { %v1990_v40 = vpop.eup %1989 }
0x1517   :  { %v1057_v36 = vmul.f32 %v1990_v40, %v1055_v35  ;;  %vm1062_vm1 = vweird.f32 %v1990_v40 }
0x1518   :  { %vm1063_vm3 = vmor %vm1061_vm2, %vm1062_vm1 }
0x1519   :  { %v1058_v37 = vsub.f32 1.0, %v1057_v36 }
0x151b   :  { %v1059_v42 = vmul.f32 %v1990_v40, %v1058_v37 }
0x151d   :  { %v1060_v48 = vadd.f32 %v1990_v40, %v1059_v42 }
0x151f   :  { %v1064_v44 = vsel %vm1063_vm3, %v1990_v40, %v1060_v48 }
0x1520   :  { %v1069_v49 = vsel %vm1066_vm4, %v1068_v43, %v1064_v44 }
0x1521   :  { %v1071_v1 = vmul.f32 2.0, %v1069_v49 }
0x1523   :  { %v1072_v50 = vmul.f32 %v1071_v1, %v978_v16 }
0x1525   :  { %1854 = vmatmul.msk.f32.vlgmr.msra.gmra.mxu2 %vm158_vm11, %v1072_v50  ;;  %v1503_v50 = vld.sshfl [vmem:[#allocation1] sm:$0xff pattern:$0x73625140] }
0x15a8   :  { %v1093_v51 = vpop.f32.mrf.mxu2 }
0x15a9   :  { %1097 = vrot.lane.b32.xlu2 %v1093_v51, %s2187_s5 }
0x1603   :  { %v1098_v52 = vpop.permute.xlu2 %1097 }
0x1604   :  { %v1100_v53 = vadd.f32 %v1098_v52, %v1049_v32 }
0x1606   :  { %v1101_v56 = vadd.f32 %v1100_v53, %v2349_v17 }
0x1608   :  { %1991 = vtanh.f32 %v1101_v56  ;;  %v1855_v58 = vmul.f32 -1.442695, %v1101_v56 }
0x160a   :  { %1993 = vpow2.f32 %v1855_v58 }
0x160e   :  { %v1992_v57 = vpop.eup %1991 }
0x160f   :  { %1124 = vrot.lane.b32.xlu0 %v1992_v57, %s2191_s26 }
0x1610   :  { %v1994_v59 = vpop.eup %1993 }
0x1611   :  { %v1105_v6 = vadd.f32 1.0, %v1994_v59 }
0x1613   :  { %1995 = vrcp.f32 %v1105_v6  ;;  %v1117_v61 = vand.u32 2147483648, %v1105_v6  ;;  %vm1111_vm7 = vweird.f32 %v1105_v6  ;;  %v1115_v62 = vand.u32 2147483647, %v1105_v6 }
0x1615   :  { %v1118_v2 = vor.u32 1.1754944e-38, %v1117_v61  ;;  %vm1116_vm9 = vcmp.eq.f32.partialorder %v1115_v62, 8.507059e+37 }
0x1619   :  { %v1996_v38 = vpop.eup %1995 }
0x161a   :  { %v1107_v7 = vmul.f32 %v1996_v38, %v1105_v6  ;;  %vm1112_vm5 = vweird.f32 %v1996_v38 }
0x161b   :  { %vm1113_vm8 = vmor %vm1111_vm7, %vm1112_vm5 }
0x161c   :  { %v1108_v8 = vsub.f32 1.0, %v1107_v7 }
0x161e   :  { %v1109_v60 = vmul.f32 %v1996_v38, %v1108_v8 }
0x1620   :  { %v1110_v9 = vadd.f32 %v1996_v38, %v1109_v60 }
0x1622   :  { %v1114_v0 = vsel %vm1113_vm8, %v1996_v38, %v1110_v9 }
0x1623   :  { %v1119_v4 = vsel %vm1116_vm9, %v1118_v2, %v1114_v0 }
0x1624   :  { %v1122_v5 = vmul.f32 %v1119_v4, %v2441_v13 }
0x1681   :  { %v1125_v3 = vpop.permute.xlu0 %1124 }
0x1682   :  { %v1127_v54 = vmul.f32 %v1125_v3, %v1119_v4 }
0x1684   :  { %1129 = vrot.lane.b32.xlu1 %v1127_v54, %s2187_s5 }
0x16f6   :  { %v1130_v10 = vpop.permute.xlu1 %1129 }
0x16f7   :  { %v2457_v12 = vadd.f32 %v1130_v10, %v1122_v5 }
0x16f9   :  { %1997 = vtanh.f32 %v2457_v12 }
0x16ff   :  { %v1998_v14 = vpop.eup %1997 }
0x1700   :  { %1135 = vrot.lane.b32.xlu2 %v1998_v14, %s2192_s6 }
0x175a   :  { %v1136_v15 = vpop.permute.xlu2 %1135 }
0x175b   :  { %v1138_v63 = vmul.f32 %v1136_v15, %v1119_v4 }
0x175d   :  { %1140 = vrot.lane.b32.xlu0 %v1138_v63, %s2193_s27 }
0x17cf   :  { %v1141_v16 = vpop.permute.xlu0 %1140 }
0x17d0   :  { %1144 = vst.msk [vmem:[#allocation2 + $0xa] sm:$0x3] %vm329_vm0, %v1141_v16  ;;  %1856 = vmatmul.msk.f32.vlgmr.msrb.gmra.mxu1 %vm158_vm11, %v1141_v16 }
0x17d7   :  { %v1476_v11 = vld [vmem:[#allocation2 + $0xa] sm:$0x3] }
0x17d8   :  { %1498 = vst [vmem:[#allocation1 + $0x21] ss:$4 sm:$0xff] %v1476_v11 }
0x184d   :  { %v1164_v13 = vpop.f32.mrf.mxu1 }
0x184e   :  { %v1857_v18 = vmul.f32 -1.442695, %v1164_v13 }
0x1850   :  { %1999 = vpow2.f32 %v1857_v18 }
0x1856   :  { %v2000_v19 = vpop.eup %1999 }
0x1857   :  { %v1170_v31 = vadd.f32 1.0, %v2000_v19 }
0x1859   :  { %2001 = vrcp.f32 %v1170_v31  ;;  %v1182_v23 = vand.u32 2147483648, %v1170_v31  ;;  %v1180_v25 = vand.u32 2147483647, %v1170_v31  ;;  %vm1176_vm12 = vweird.f32 %v1170_v31 }
0x185b   :  { %v1183_v27 = vor.u32 1.1754944e-38, %v1182_v23  ;;  %vm1181_vm14 = vcmp.eq.f32.partialorder %v1180_v25, 8.507059e+37 }
0x185f   :  { %v2002_v20 = vpop.eup %2001 }
0x1860   :  { %v1172_v21 = vmul.f32 %v2002_v20, %v1170_v31  ;;  %vm1177_vm10 = vweird.f32 %v2002_v20 }
0x1861   :  { %vm1178_vm13 = vmor %vm1176_vm12, %vm1177_vm10 }
0x1862   :  { %v1173_v22 = vsub.f32 1.0, %v1172_v21 }
0x1864   :  { %v1174_v24 = vmul.f32 %v2002_v20, %v1173_v22 }
0x1866   :  { %v1175_v26 = vadd.f32 %v2002_v20, %v1174_v24 }
0x1868   :  { %v1179_v39 = vsel %vm1178_vm13, %v2002_v20, %v1175_v26 }
0x1869   :  { %v1184_v55 = vsel %vm1181_vm14, %v1183_v27, %v1179_v39 }
0x186a   :  { %v1186_v28 = vmul.f32 2.0, %v1184_v55 }
0x186c   :  { %v1191_v29 = vmul.f32 %v2321_v45, %v1186_v28 }
0x186e   :  { %1858 = vmatmul.msk.f32.vlgmr.msrb.gmra.mxu3 %vm209_vm6, %v1191_v29 }
0x18f1   :  { %v1212_v30 = vpop.f32.mrf.mxu3 }
0x18f2   :  { %v1859_v32 = vmul.f32 -1.442695, %v1212_v30 }
0x18f4   :  { %2003 = vpow2.f32 %v1859_v32 }
0x18fa   :  { %v2004_v34 = vpop.eup %2003 }
0x18fb   :  { %v1218_v35 = vadd.f32 1.0, %v2004_v34 }
0x18fd   :  { %2005 = vrcp.f32 %v1218_v35  ;;  %v1230_v41 = vand.u32 2147483648, %v1218_v35  ;;  %v1228_v47 = vand.u32 2147483647, %v1218_v35  ;;  %vm1224_vm1 = vweird.f32 %v1218_v35 }
0x18ff   :  { %v1231_v45 = vor.u32 1.1754944e-38, %v1230_v41  ;;  %vm1229_vm3 = vcmp.eq.f32.partialorder %v1228_v47, 8.507059e+37 }
0x1903   :  { %v2006_v40 = vpop.eup %2005 }
0x1904   :  { %v1220_v36 = vmul.f32 %v2006_v40, %v1218_v35  ;;  %vm1225_vm15 = vweird.f32 %v2006_v40 }
0x1905   :  { %vm1226_vm2 = vmor %vm1224_vm1, %vm1225_vm15 }
0x1906   :  { %v1221_v37 = vsub.f32 1.0, %v1220_v36 }
0x1908   :  { %v1222_v42 = vmul.f32 %v2006_v40, %v1221_v37 }
0x190a   :  { %v1223_v48 = vadd.f32 %v2006_v40, %v1222_v42 }
0x190c   :  { %v1227_v43 = vsel %vm1226_vm2, %v2006_v40, %v1223_v48 }
0x190d   :  { %v1232_v44 = vsel %vm1229_vm3, %v1231_v45, %v1227_v43 }
0x190e   :  { %v1234_v49 = vmul.f32 2.0, %v1232_v44 }
0x1910   :  { %v1235_v1 = vmul.f32 %v1234_v49, %v1141_v16 }
0x1912   :  { %1860 = vmatmul.msk.f32.vlgmr.msra.gmra.mxu0 %vm158_vm11, %v1235_v1 }
0x191a   :  { %1868 = vmatmul.msk.f32.vlgmr.msrb.gmra.mxu0 %vm158_vm11, %v1503_v50 }
0x198f   :  { %v1256_v51 = vpop.f32.mrf.mxu0 }
0x1990   :  { %1260 = vrot.lane.b32.xlu1 %v1256_v51, %s2187_s5 }
0x1a02   :  { %v1261_v52 = vpop.permute.xlu1 %1260 }
0x1a03   :  { %v1263_v53 = vadd.f32 %v1261_v52, %v1212_v30 }
0x1a05   :  { %v1264_v56 = vadd.f32 %v1263_v53, %v2349_v17 }
0x1a07   :  { %2007 = vtanh.f32 %v1264_v56  ;;  %v1861_v58 = vmul.f32 -1.442695, %v1264_v56 }
0x1a09   :  { %2009 = vpow2.f32 %v1861_v58 }
0x1a0d   :  { %v2008_v57 = vpop.eup %2007 }
0x1a0e   :  { %1287 = vrot.lane.b32.xlu2 %v2008_v57, %s2191_s26 }
0x1a0f   :  { %v2010_v59 = vpop.eup %2009 }
0x1a10   :  { %v1268_v6 = vadd.f32 1.0, %v2010_v59 }
0x1a12   :  { %2011 = vrcp.f32 %v1268_v6  ;;  %v1280_v61 = vand.u32 2147483648, %v1268_v6  ;;  %vm1274_vm5 = vweird.f32 %v1268_v6  ;;  %v1278_v62 = vand.u32 2147483647, %v1268_v6 }
0x1a14   :  { %v1281_v2 = vor.u32 1.1754944e-38, %v1280_v61  ;;  %vm1279_vm8 = vcmp.eq.f32.partialorder %v1278_v62, 8.507059e+37 }
0x1a18   :  { %v2012_v38 = vpop.eup %2011 }
0x1a19   :  { %v1270_v7 = vmul.f32 %v2012_v38, %v1268_v6  ;;  %vm1275_vm4 = vweird.f32 %v2012_v38 }
0x1a1a   :  { %vm1276_vm7 = vmor %vm1274_vm5, %vm1275_vm4 }
0x1a1b   :  { %v1271_v8 = vsub.f32 1.0, %v1270_v7 }
0x1a1d   :  { %v1272_v60 = vmul.f32 %v2012_v38, %v1271_v8 }
0x1a1f   :  { %v1273_v9 = vadd.f32 %v2012_v38, %v1272_v60 }
0x1a21   :  { %v1277_v0 = vsel %vm1276_vm7, %v2012_v38, %v1273_v9  ;;  %vm1655_vm7 = vcmask 91208  }
0x1a22   :  { %v1282_v4 = vsel %vm1279_vm8, %v1281_v2, %v1277_v0  ;;  %v2487_v2 = vpop.f32.mrf.mxu0  ;;  %vm1750_vm8 = vcmask 189608  }
0x1a23   :  { %v1285_v5 = vmul.f32 %v1282_v4, %v2457_v12 }
0x1a68   :  { %v1288_v3 = vpop.permute.xlu2 %1287 }
0x1a69   :  { %v1290_v54 = vmul.f32 %v1288_v3, %v1282_v4  ;;  %v1534_v3 = vrot.slane %v2487_v2, 2 }
0x1a6b   :  { %1292 = vrot.lane.b32.xlu0 %v1290_v54, %s2187_s5 }
0x1add   :  { %v1293_v10 = vpop.permute.xlu0 %1292 }
0x1ade   :  { %v2473_v14 = vadd.f32 %v1293_v10, %v1285_v5 }
0x1ae0   :  { %2013 = vtanh.f32 %v2473_v14 }
0x1ae6   :  { %v2014_v15 = vpop.eup %2013 }
0x1ae7   :  { %1298 = vrot.lane.b32.xlu1 %v2014_v15, %s2192_s6 }
0x1b59   :  { %v1299_v63 = vpop.permute.xlu1 %1298 }
0x1b5a   :  { %v1301_v16 = vmul.f32 %v1299_v63, %v1282_v4  ;;  %v2494_v4 = vrot.slane %v2487_v2, 6 }
0x1b5c   :  { %1303 = vrot.lane.b32.xlu2 %v1301_v16, %s2193_s27 }
0x1bb6   :  { %v1304_v11 = vpop.permute.xlu2 %1303 }
0x1bb7   :  { %1307 = vst.msk [vmem:[#allocation2 + $0xc] sm:$0x3] %vm329_vm0, %v1304_v11  ;;  %1862 = vmatmul.msk.f32.vlgmr.msrb.gmra.mxu2 %vm158_vm11, %v1304_v11 }
0x1bbe   :  { %v1477_v13 = vld [vmem:[#allocation2 + $0xc] sm:$0x3] }
0x1bbf   :  { %1500 = vst [vmem:[#allocation1 + $0x22] ss:$4 sm:$0xff] %v1477_v13 }
0x1c3a   :  { %v1327_v12 = vpop.f32.mrf.mxu2 }
0x1c3b   :  { %v1863_v18 = vmul.f32 -1.442695, %v1327_v12 }
0x1c3d   :  { %2015 = vpow2.f32 %v1863_v18 }
0x1c43   :  { %v2016_v19 = vpop.eup %2015 }
0x1c44   :  { %v1333_v31 = vadd.f32 1.0, %v2016_v19 }
0x1c46   :  { %2017 = vrcp.f32 %v1333_v31  ;;  %v1345_v23 = vand.u32 2147483648, %v1333_v31  ;;  %v1343_v25 = vand.u32 2147483647, %v1333_v31  ;;  %vm1339_vm10 = vweird.f32 %v1333_v31 }
0x1c48   :  { %v1346_v27 = vor.u32 1.1754944e-38, %v1345_v23  ;;  %vm1344_vm13 = vcmp.eq.f32.partialorder %v1343_v25, 8.507059e+37 }
0x1c4c   :  { %v2018_v20 = vpop.eup %2017 }
0x1c4d   :  { %v1335_v21 = vmul.f32 %v2018_v20, %v1333_v31  ;;  %vm1340_vm9 = vweird.f32 %v2018_v20 }
0x1c4e   :  { %vm1341_vm12 = vmor %vm1339_vm10, %vm1340_vm9  ;;  %vm1610_vm9 = vcmask 17408   ;;  %vm1672_vm10 = vcmask 23552  }
0x1c4f   :  { %v1336_v22 = vsub.f32 1.0, %v1335_v21  ;;  %v2529_v21 = vld [vmem:[%s2591_s8] ss:$0 sm:$0xff] }
0x1c51   :  { %v1337_v24 = vmul.f32 %v2018_v20, %v1336_v22 }
0x1c53   :  { %v1338_v26 = vadd.f32 %v2018_v20, %v1337_v24 }
0x1c55   :  { %v1342_v39 = vsel %vm1341_vm12, %v2018_v20, %v1338_v26  ;;  %vm1798_vm12 = vcmask 9216  }
0x1c56   :  { %v1347_v55 = vsel %vm1344_vm13, %v1346_v27, %v1342_v39 }
0x1c57   :  { %v1349_v28 = vmul.f32 2.0, %v1347_v55 }
0x1c59   :  { %v1354_v29 = vmul.f32 %v2324_v46, %v1349_v28 }
0x1c5b   :  { %1864 = vmatmul.msk.f32.vlgmr.msra.gmra.mxu1 %vm209_vm6, %v1354_v29 }
0x1cd8   :  { %v1375_v30 = vpop.f32.mrf.mxu1 }
0x1cd9   :  { %v1865_v32 = vmul.f32 -1.442695, %v1375_v30 }
0x1cdb   :  { %2019 = vpow2.f32 %v1865_v32 }
0x1ce1   :  { %v2020_v33 = vpop.eup %2019 }
0x1ce2   :  { %v1381_v34 = vadd.f32 1.0, %v2020_v33 }
0x1ce4   :  { %2021 = vrcp.f32 %v1381_v34  ;;  %v1393_v37 = vand.u32 2147483648, %v1381_v34  ;;  %v1391_v42 = vand.u32 2147483647, %v1381_v34  ;;  %vm1387_vm15 = vweird.f32 %v1381_v34 }
0x1ce6   :  { %v1394_v48 = vor.u32 1.1754944e-38, %v1393_v37  ;;  %vm1392_vm2 = vcmp.eq.f32.partialorder %v1391_v42, 8.507059e+37 }
0x1cea   :  { %v2022_v35 = vpop.eup %2021 }
0x1ceb   :  { %v1383_v40 = vmul.f32 %v2022_v35, %v1381_v34  ;;  %vm1388_vm14 = vweird.f32 %v2022_v35 }
0x1cec   :  { %vm1389_vm1 = vmor %vm1387_vm15, %vm1388_vm14 }
0x1ced   :  { %v1384_v36 = vsub.f32 1.0, %v1383_v40 }
0x1cef   :  { %v1385_v41 = vmul.f32 %v2022_v35, %v1384_v36 }
0x1cf1   :  { %v1386_v47 = vadd.f32 %v2022_v35, %v1385_v41 }
0x1cf3   :  { %v1390_v46 = vsel %vm1389_vm1, %v2022_v35, %v1386_v47 }
0x1cf4   :  { %v1395_v45 = vsel %vm1392_vm2, %v1394_v48, %v1390_v46 }
0x1cf5   :  { %v1397_v43 = vmul.f32 2.0, %v1395_v45 }
0x1cf7   :  { %v1398_v44 = vmul.f32 %v1397_v43, %v1304_v11 }
0x1cf9   :  { %1866 = vmatmul.msk.f32.vlgmr.msra.gmra.mxu3 %vm158_vm11, %v1398_v44 }
0x1d7c   :  { %v1419_v49 = vpop.f32.mrf.mxu3 }
0x1d7d   :  { %1423 = vrot.lane.b32.xlu0 %v1419_v49, %s2187_s5 }
0x1def   :  { %v1424_v1 = vpop.permute.xlu0 %1423 }
0x1df0   :  { %v1426_v50 = vadd.f32 %v1424_v1, %v1375_v30 }
0x1df2   :  { %v1427_v51 = vadd.f32 %v1426_v50, %v2349_v17 }
0x1df4   :  { %2023 = vtanh.f32 %v1427_v51  ;;  %v1867_v53 = vmul.f32 -1.442695, %v1427_v51 }
0x1df6   :  { %2025 = vpow2.f32 %v1867_v53  ;;  %v1544_v53 = vld [vmem:[%s2592_s9] sm:$0xff] }
0x1dfa   :  { %v2024_v52 = vpop.eup %2023 }
0x1dfb   :  { %1450 = vrot.lane.b32.xlu1 %v2024_v52, %s2191_s26 }
0x1dfc   :  { %v2026_v56 = vpop.eup %2025 }
0x1dfd   :  { %v1431_v57 = vadd.f32 1.0, %v2026_v56 }
0x1dff   :  { %2027 = vrcp.f32 %v1431_v57  ;;  %v1443_v8 = vand.u32 2147483648, %v1431_v57  ;;  %vm1437_vm3 = vweird.f32 %v1431_v57  ;;  %v1441_v60 = vand.u32 2147483647, %v1431_v57 }
0x1e01   :  { %v1444_v9 = vor.u32 1.1754944e-38, %v1443_v8  ;;  %vm1442_vm5 = vcmp.eq.f32.partialorder %v1441_v60, 8.507059e+37 }
0x1e05   :  { %v2028_v58 = vpop.eup %2027 }
0x1e06   :  { %v1433_v59 = vmul.f32 %v2028_v58, %v1431_v57  ;;  %vm1438_vm6 = vweird.f32 %v2028_v58  ;;  %v1671_v57 = vrot.slane %v1544_v53, 3 }
0x1e07   :  { %vm1439_vm4 = vmor %vm1437_vm3, %vm1438_vm6 }
0x1e08   :  { %v1434_v6 = vsub.f32 1.0, %v1433_v59 }
0x1e0a   :  { %v1435_v38 = vmul.f32 %v2028_v58, %v1434_v6 }
0x1e0c   :  { %v1436_v7 = vadd.f32 %v2028_v58, %v1435_v38  ;;  %v1545_v38 = vld [vmem:[%s2592_s9 + $0x8] sm:$0x1]  ;;  %s2200_s9 = smov 107  }
0x1e0e   :  { %v1440_v17 = vsel %vm1439_vm4, %v2028_v58, %v1436_v7  ;;  %v1765_v58 = vrot.slane %v1544_v53, 6 }
0x1e0f   :  { %v1445_v62 = vsel %vm1442_vm5, %v1444_v9, %v1440_v17  ;;  %v1766_v17 = vrot.slane %v1545_v38, 6 }
0x1e10   :  { %v1448_v54 = vmul.f32 %v1445_v62, %v2473_v14  ;;  %v2506_v14 = vrot.slane %v2487_v2, 4 }
0x1e6d   :  { %v1451_v61 = vpop.permute.xlu1 %1450 }
0x1e6e   :  { %v1453_v0 = vmul.f32 %v1451_v61, %v1445_v62 }
0x1e70   :  { %1455 = vrot.lane.b32.xlu2 %v1453_v0, %s2187_s5 }
0x1e78   :  { %1547 = vrot.lane.b32.xlu2 %v1534_v3, %s2194_s28 }
0x1e80   :  { %1551 = vrot.lane.b32.xlu2 %v2494_v4, %s2194_s28 }
0x1eca   :  { %v1456_v5 = vpop.permute.xlu2 %1455 }
0x1ecb   :  { %v1458_v10 = vadd.f32 %v1456_v5, %v1448_v54 }
0x1ecd   :  { %2029 = vtanh.f32 %v1458_v10 }
0x1ed2   :  { %v1548_v22 = vpop.permute.xlu2 %1547 }
0x1ed3   :  { %v2030_v15 = vpop.eup %2029  ;;  %v1565_v35 = vadd.f32 %v1548_v22, %v2487_v2 }
0x1ed4   :  { %1461 = vrot.lane.b32.xlu0 %v2030_v15, %s2192_s6 }
0x1eda   :  { %v1552_v23 = vpop.permute.xlu2 %1551 }
0x1edb   :  { %v1567_v56 = vadd.f32 %v1552_v23, %v2506_v14 }
0x1edc   :  { %1573 = vrot.lane.b32.xlu0 %v2494_v4, %s2195_s29 }
0x1ee4   :  { %1622 = vrot.lane.b32.xlu0 %v2494_v4, %s2196_s3 }
0x1f46   :  { %v1462_v63 = vpop.permute.xlu0 %1461 }
0x1f47   :  { %v1464_v16 = vmul.f32 %v1462_v63, %v1445_v62 }
0x1f49   :  { %1466 = vrot.lane.b32.xlu1 %v1464_v16, %s2193_s27 }
0x1f4e   :  { %v1574_v25 = vpop.permute.xlu0 %1573 }
0x1f51   :  { %1549 = vrot.lane.b32.xlu1 %v2506_v14, %s2194_s28 }
0x1f56   :  { %v1623_v39 = vpop.permute.xlu0 %1622 }
0x1f59   :  { %1571 = vrot.lane.b32.xlu1 %v2506_v14, %s2195_s29 }
0x1fbb   :  { %v1467_v11 = vpop.permute.xlu1 %1466 }
0x1fbc   :  { %1470 = vst.msk [vmem:[#allocation2 + $0xe] sm:$0x3] %vm329_vm0, %v1467_v11  ;;  %vm1764_vm0 = vcmask 1041408  }
0x1fbd   :  { %v1767_v0 = vsel %vm1764_vm0, %v1765_v58, %v1766_v17 }
0x1fc3   :  { %v1478_v13 = vld [vmem:[#allocation2 + $0xe] sm:$0x3]  ;;  %v1550_v24 = vpop.permute.xlu1 %1549 }
0x1fc4   :  { %1502 = vst [vmem:[#allocation1 + $0x23] ss:$4 sm:$0xff] %v1478_v13  ;;  %v1566_v42 = vadd.f32 %v1550_v24, %v1534_v3 }
0x1fc6   :  { %v1590_v49 = vadd.f32 %v1574_v25, %v1566_v42 }
0x1fcb   :  { %v1504_v12 = vld.sshfl [vmem:[#allocation1 + $0x20] sm:$0xff pattern:$0x73625140]  ;;  %v1572_v27 = vpop.permute.xlu1 %1571 }
0x1fcc   :  { %1869 = vmatmul.msk.f32.gmra.mxu0 %vm158_vm11, %v1504_v12  ;;  %v2541_v36 = vadd.f32 %v1572_v27, %v1565_v35  ;;  %vm1675_vm11 = vcmask 1042432  }
0x1fcd   :  { %1872 = vmatpush.msk.msrb.mxu1 %vm1675_vm11, %v1544_v53  ;;  %1870 = vmatpush.msk.msra.mxu2 %vm1675_vm11, %v1671_v57 }
0x1fce   :  { %v1637_v45 = vadd.f32 %v1623_v39, %v2541_v36  ;;  %1874 = vmatpush.msk.msrb.mxu3 %vm1675_vm11, %v1767_v0 }
0x2049   :  { %v1529_v18 = vpop.f32.mrf.mxu0 }
0x204a   :  { %1624 = vrot.lane.b32.xlu2 %v1529_v18, %s2196_s3  ;;  %1575 = vrot.lane.b32.xlu1 %v1529_v18, %s2195_s29  ;;  %v1539_v19 = vrot.slane %v1529_v18, 6  ;;  %v1538_v31 = vrot.slane %v1529_v18, 4  ;;  %v2517_v20 = vrot.slane %v1529_v18, 2 }
0x204b   :  { %1553 = vrot.lane.b32.xlu0 %v1529_v18, %s2194_s28 }
0x2052   :  { %1630 = vrot.lane.b32.xlu1 %v1539_v19, %s2196_s3  ;;  %1579 = vrot.lane.b32.xlu2 %v1538_v31, %s2195_s29 }
0x2053   :  { %1555 = vrot.lane.b32.xlu0 %v2517_v20, %s2194_s28 }
0x205a   :  { %1628 = vrot.lane.b32.xlu1 %v1538_v31, %s2196_s3  ;;  %1577 = vrot.lane.b32.xlu2 %v2517_v20, %s2195_s29 }
0x205b   :  { %1723 = vrot.lane.b32.xlu0 %v1529_v18, %s2197_s30 }
0x2062   :  { %1725 = vrot.lane.b32.xlu1 %v2517_v20, %s2197_s30  ;;  %1642 = vrot.lane.b32.xlu2 %v2529_v21, %s2198_s14 }
0x2063   :  { %1626 = vrot.lane.b32.xlu0 %v2517_v20, %s2196_s3 }
0x206a   :  { %1739 = vrot.lane.b32.xlu1 %v2529_v21, %s2199_s15  ;;  %1727 = vrot.lane.b32.xlu2 %v1538_v31, %s2197_s30 }
0x206b   :  { %1729 = vrot.lane.b32.xlu0 %v1539_v19, %s2197_s30 }
0x2072   :  { %1557 = vrot.lane.b32.xlu2 %v1538_v31, %s2194_s28 }
0x2073   :  { %1581 = vrot.lane.b32.xlu0 %v1539_v19, %s2195_s29 }
0x20a4   :  { %v1625_v26 = vpop.permute.xlu2 %1624 }
0x20a5   :  { %v1638_v51 = vadd.f32 %v1625_v26, %v1590_v49 }
0x20ac   :  { %v1580_v55 = vpop.permute.xlu2 %1579 }
0x20b4   :  { %v1578_v30 = vpop.permute.xlu2 %1577 }
0x20bc   :  { %v1576_v28 = vpop.permute.xlu1 %1575  ;;  %v1643_v47 = vpop.permute.xlu2 %1642 }
0x20bd   :  { %v1554_v29 = vpop.permute.xlu0 %1553  ;;  %v1645_v1 = vadd.f32 %v1643_v47, %v1637_v45  ;;  %v1646_v59 = vadd.f32 %v1643_v47, %v1638_v51  ;;  %v1591_v7 = vadd.f32 %v1576_v28, %v1567_v56 }
0x20be   :  { %v1568_v37 = vadd.f32 %v1554_v29, %v2494_v4 }
0x20bf   :  { %v1650_v6 = vmax.f32 %v1645_v1, 0.0  ;;  %v1651_v2 = vmax.f32 %v1646_v59, 0.0  ;;  %v1600_v1 = vadd.f32 %v2529_v21, %v1591_v7 }
0x20c0   :  { %v1592_v44 = vadd.f32 %v1578_v30, %v1568_v37  ;;  %v1598_v37 = vadd.f32 %v2529_v21, %v2541_v36 }
0x20c1   :  { %v1656_v4 = vsel %vm1655_vm7, %v1650_v6, -inf  ;;  %v1657_v14 = vsel %vm1655_vm7, %v1651_v2, -inf }
0x20c2   :  { %v1601_v42 = vadd.f32 %v2529_v21, %v1592_v44  ;;  %v1604_v53 = vmax.f32 %v1598_v37, 0.0 }
0x20c4   :  { %v1631_v32 = vpop.permute.xlu1 %1630  ;;  %v1728_v3 = vpop.permute.xlu2 %1727  ;;  %v1607_v56 = vmax.f32 %v1601_v42, 0.0  ;;  %v1611_v59 = vsel %vm1610_vm9, %v1604_v53, -inf }
0x20c5   :  { %v1556_v33 = vpop.permute.xlu0 %1555 }
0x20c6   :  { %v1569_v34 = vadd.f32 %v1556_v33, %v1529_v18  ;;  %v1614_v6 = vsel %vm1610_vm9, %v1607_v56, -inf }
0x20c8   :  { %v2539_v40 = vadd.f32 %v1580_v55, %v1569_v34 }
0x20ca   :  { %v1641_v41 = vadd.f32 %v1631_v32, %v2539_v40  ;;  %v1602_v32 = vadd.f32 %v2529_v21, %v2539_v40 }
0x20cc   :  { %v1629_v48 = vpop.permute.xlu1 %1628  ;;  %v1649_v46 = vadd.f32 %v1643_v47, %v1641_v41  ;;  %v1558_v30 = vpop.permute.xlu2 %1557  ;;  %v1599_v41 = vadd.f32 %v2529_v21, %v1590_v49 }
0x20cd   :  { %v1724_v43 = vpop.permute.xlu0 %1723  ;;  %v1640_v50 = vadd.f32 %v1629_v48, %v1592_v44 }
0x20ce   :  { %v1654_v52 = vmax.f32 %v1649_v46, 0.0  ;;  %v1735_v63 = vadd.f32 %v1724_v43, %v1637_v45  ;;  %v1605_v36 = vmax.f32 %v1599_v41, 0.0 }
0x20cf   :  { %v1648_v8 = vadd.f32 %v1643_v47, %v1640_v50 }
0x20d0   :  { %v1660_v9 = vsel %vm1655_vm7, %v1654_v52, -inf  ;;  %v1612_v38 = vsel %vm1610_vm9, %v1605_v36, -inf }
0x20d1   :  { %v1653_v54 = vmax.f32 %v1648_v8, 0.0  ;;  %v1661_v5 = vmax.f32 %v1656_v4, %v1660_v9 }
0x20d3   :  { %v1659_v13 = vsel %vm1655_vm7, %v1653_v54, -inf  ;;  %v1662_v12 = vmax.f32 %v1661_v5, %v1657_v14  ;;  %v1898_v5 = vld [vmem:[%s2593_s10] ss:$0 sm:$0xff] }
0x20d4   :  { %v1726_v60 = vpop.permute.xlu1 %1725 }
0x20d5   :  { %v1627_v61 = vpop.permute.xlu0 %1626  ;;  %v1736_v16 = vadd.f32 %v1726_v60, %v1638_v51 }
0x20d6   :  { %v1639_v62 = vadd.f32 %v1627_v61, %v1591_v7 }
0x20d8   :  { %v1647_v10 = vadd.f32 %v1643_v47, %v1639_v62  ;;  %v1737_v11 = vadd.f32 %v1728_v3, %v1639_v62  ;;  %v1570_v47 = vadd.f32 %v1558_v30, %v2517_v20  ;;  %v1606_v20 = vmax.f32 %v1600_v1, 0.0 }
0x20da   :  { %v1652_v15 = vmax.f32 %v1647_v10, 0.0  ;;  %v1613_v17 = vsel %vm1610_vm9, %v1606_v20, -inf }
0x20db   :  { %v1620_v9 = vmax.f32 %v1613_v17, %v1614_v6 }
0x20dc   :  { %v1658_v18 = vsel %vm1655_vm7, %v1652_v15, -inf  ;;  %v1740_v19 = vpop.permute.xlu1 %1739 }
0x20dd   :  { %v1663_v31 = vmax.f32 %v1658_v18, %v1659_v13  ;;  %v1742_v22 = vadd.f32 %v1740_v19, %v1735_v63  ;;  %v1743_v23 = vadd.f32 %v1740_v19, %v1736_v16  ;;  %v1744_v24 = vadd.f32 %v1740_v19, %v1737_v11  ;;  %v1730_v25 = vpop.permute.xlu0 %1729 }
0x20de   :  { %v1738_v26 = vadd.f32 %v1730_v25, %v1640_v50  ;;  %v1608_v50 = vmax.f32 %v1602_v32, 0.0 }
0x20df   :  { %v1664_v27 = vmax.f32 %v1662_v12, %v1663_v31  ;;  %v1746_v39 = vmax.f32 %v1742_v22, 0.0  ;;  %v1747_v55 = vmax.f32 %v1743_v23, 0.0  ;;  %v1748_v28 = vmax.f32 %v1744_v24, 0.0 }
0x20e0   :  { %v1745_v29 = vadd.f32 %v1740_v19, %v1738_v26  ;;  %v1615_v57 = vsel %vm1610_vm9, %v1608_v50, -inf }
0x20e1   :  { %1666 = vst [vmem:[#allocation1] ss:$4 sm:$0xff] %v1664_v27  ;;  %v1751_v33 = vsel %vm1750_vm8, %v1746_v39, -inf  ;;  %v1752_v34 = vsel %vm1750_vm8, %v1747_v55, -inf  ;;  %v1753_v48 = vsel %vm1750_vm8, %v1748_v28, -inf  ;;  %v1616_v8 = vmax.f32 %v1611_v59, %v1615_v57 }
0x20e2   :  { %v1749_v35 = vmax.f32 %v1745_v29, 0.0  ;;  %v1755_v45 = vmax.f32 %v1751_v33, %v1752_v34 }
0x20e4   :  { %v1754_v46 = vsel %vm1750_vm8, %v1749_v35, -inf }
0x20e5   :  { %v1756_v40 = vmax.f32 %v1753_v48, %v1754_v46  ;;  %v1582_v43 = vpop.permute.xlu0 %1581 }
0x20e6   :  { %v1594_v51 = vadd.f32 %v1582_v43, %v1570_v47 }
0x20e7   :  { %v1757_v52 = vmax.f32 %v1755_v45, %v1756_v40 }
0x20e8   :  { %v1603_v49 = vadd.f32 %v2529_v21, %v1594_v51  ;;  %v1667_v44 = vld.sshfl [vmem:[#allocation1] sm:$0xff pattern:$0x73625140] }
0x20e9   :  { %1668 = vrot.lane.b32.xlu1 %v1667_v44, %s2196_s3  ;;  %1759 = vst [vmem:[#allocation1] ss:$4 sm:$0xff] %v1757_v52 }
0x20ea   :  { %v1609_v58 = vmax.f32 %v1603_v49, 0.0 }
0x20ec   :  { %v1617_v7 = vsel %vm1610_vm9, %v1609_v58, -inf }
0x20ed   :  { %v1618_v60 = vmax.f32 %v1612_v38, %v1617_v7 }
0x20ef   :  { %v1619_v61 = vmax.f32 %v1616_v8, %v1618_v60 }
0x20f0   :  { %v1760_v62 = vld.sshfl [vmem:[#allocation1] sm:$0xff pattern:$0x73625140] }
0x20f1   :  { %v1621_v21 = vmax.f32 %v1619_v61, %v1620_v9  ;;  %1761 = vrot.lane.b32.xlu2 %v1760_v62, %s2200_s9 }
0x20f3   :  { %1873 = vmatmul.msk.f32.vlgmr.msrb.gmra.mxu1 %vm1672_vm10, %v1621_v21 }
0x214b   :  { %v1762_v0 = vpop.permute.xlu2 %1761 }
0x214c   :  { %1875 = vmatmul.msk.f32.vlgmr.msrb.gmra.mxu3 %vm1672_vm10, %v1762_v0 }
0x215b   :  { %v1669_v2 = vpop.permute.xlu1 %1668 }
0x215c   :  { %1871 = vmatmul.msk.f32.vlgmr.msra.gmra.mxu2 %vm1672_vm10, %v1669_v2 }
0x2170   :  { %v1720_v3 = vpop.f32.mrf.mxu1 }
0x21cf   :  { %v1789_v10 = vpop.f32.mrf.mxu3 }
0x21df   :  { %v1695_v4 = vpop.f32.mrf.mxu2 }
0x21e0   :  { %v1721_v54 = vadd.f32 %v1720_v3, %v1695_v4 }
0x21e2   :  { %v1792_v15 = vadd.f32 %v1789_v10, %v1721_v54 }
0x21e4   :  { %v1797_v63 = vadd.f32 %v1898_v5, %v1792_v15 }
0x21e6   :  { %1799 = vst.msk [vmem:[#allocation12] sm:$0x3] %vm1798_vm12, %v1797_v63 }
0x21e7   :  { %1810 = dma.vmem_to_hbm [thread:$0]  %s1806_s20, 32, %s1808_s7, [#allocation5]  }
0x21e8   :  { %2181 = dma.done.wait [#allocation5], 32  }
0x21e9   :  { %2182 = vsyncadd [#allocation5], 4294967264 }
0x21ea   :  { %1815 = vsyncpa [#allocation4], 1 }
0x21eb   :  { %1816 = vsyncpa [#allocation7], 1 }
0x21ec   :  { %1817 = vsyncpa [#allocation10], 1 }
0x21ed   :  { %1818 = vsyncpa [#allocation5], 1 }

</bundles_post_ra>
